<compile_context>
chip_gen: v7x
topology: tpu7x:2x2x1
jax: 0.10.0
libtpu: 0.0.40
codegen_flags: <defaults>
</compile_context>

<pallas_src>
import functools

import jax
import jax.numpy as jnp
import numpy as np
from jax.experimental import pallas as pl
from jax.experimental.pallas import tpu as pltpu

ND = 512
LN_EPS = 1e-5
NEG_SLOPE = 0.2


def _round_up(x, m):
    return ((x + m - 1) // m) * m


def _leaky_relu(h):
    return jnp.where(h > 0, h, NEG_SLOPE * h)


def _default_act_dtype():
    """bf16 epilogue on chips with a bf16 VPU (v6e/v7x); f32 on older gens (v5e etc.)."""
    try:
        kind = jax.devices()[0].device_kind.lower()
    except Exception:
        return jnp.bfloat16
    if any(v in kind for v in ("v2", "v3", "v4", "v5")):
        return jnp.float32
    return jnp.bfloat16


def length_estimator_kernel(
    x_ref,
    w1_ref, p1_ref,
    w2_ref, p2_ref,
    w3_ref, p3_ref,
    w4_ref, b4_ref,
    o_ref,
    *,
    act_dtype,
):
    def block(h_bf16, w_ref, p_ref):
        # p_ref rows: 0 = linear bias, 1 = LN gamma, 2 = LN beta (all f32).
        p = p_ref[...]
        h = jnp.dot(h_bf16, w_ref[...], preferred_element_type=jnp.float32) + p[0:1, :]

        # One-pass LayerNorm statistics in f32.
        mu = jnp.mean(h, axis=-1, keepdims=True)
        ms = jnp.mean(h * h, axis=-1, keepdims=True)
        var = jnp.maximum(ms - mu * mu, 0.0)
        inv = jax.lax.rsqrt(var + LN_EPS)                      # (tb,1), EUP slot

        # Apply + LeakyReLU in act_dtype (bf16 on v6e/v7x, f32 on v5e).
        ha = h.astype(act_dtype)
        a = (ha - mu.astype(act_dtype)) * inv.astype(act_dtype)
        a = a * p[1:2, :].astype(act_dtype) + p[2:3, :].astype(act_dtype)
        a = _leaky_relu(a)
        return a.astype(jnp.bfloat16)                          # next MXU input

    # Block 1: Linear(input_size, 512) -> LN -> LeakyReLU(0.2) -> Dropout (eval: identity)
    h = block(x_ref[...], w1_ref, p1_ref)
    # Block 2: Linear(512, 256) -> LN -> LeakyReLU(0.2) -> Dropout (eval: identity)
    h = block(h, w2_ref, p2_ref)
    # Block 3: Linear(256, 128) -> LN -> LeakyReLU(0.2)
    h = block(h, w3_ref, p3_ref)
    # Output head: Linear(128, out_pad)  (lane-dense padded width, f32 accumulate)
    o_ref[...] = (
        jnp.dot(h, w4_ref[...], preferred_element_type=jnp.float32) + b4_ref[...]
    ).astype(o_ref.dtype)


def _choose_tb(B, max_tb=1024):
    """Large batch tiles (256-1024 preferred), but >=2 tiles whenever B > 8 so both
    v7x TensorCores get work; always a multiple of 8 (sublane)."""
    if B <= 8:
        return 8
    tb = _round_up(-(-B // 2), 8)   # ~half the batch, 8-aligned
    return min(tb, max_tb)


def length_estimator_forward(x, kparams, *, tb=None, act_dtype=None):
    """x: [B, input_size] (any float dtype). kparams: dict from pack_params()."""
    B, input_size = x.shape
    out_pad = kparams["w4"].shape[1]
    output_size = kparams["output_size"]

    if tb is None:
        tb = _choose_tb(B)
    tb = max(8, _round_up(tb, 8))
    if act_dtype is None:
        act_dtype = _default_act_dtype()

    # Pad batch to a multiple of the tile (uniform tiles, predictable VMEM), slice back.
    B_pad = _round_up(B, tb)
    xb = x.astype(jnp.bfloat16)
    if B_pad != B:
        xb = jnp.pad(xb, ((0, B_pad - B), (0, 0)))

    weights = (
        kparams["w1"], kparams["p1"],
        kparams["w2"], kparams["p2"],
        kparams["w3"], kparams["p3"],
        kparams["w4"], kparams["b4"],
    )

    def resident_spec(a):
        n = a.ndim
        return pl.BlockSpec(a.shape, lambda i, _n=n: (0,) * _n)

    in_specs = [pl.BlockSpec((tb, input_size), lambda i: (i, 0))]
    in_specs += [resident_spec(a) for a in weights]
    out_spec = pl.BlockSpec((tb, out_pad), lambda i: (i, 0))

    flops = 2 * B_pad * (
        input_size * ND + ND * (ND // 2) + (ND // 2) * (ND // 4) + (ND // 4) * out_pad
    )
    bytes_accessed = (
        int(xb.size) * 2
        + sum(int(a.size) * a.dtype.itemsize for a in weights)
        + B_pad * out_pad * 4
    )
    cost = pl.CostEstimate(
        flops=flops, transcendentals=3 * B_pad, bytes_accessed=bytes_accessed
    )

    out = pl.pallas_call(
        functools.partial(length_estimator_kernel, act_dtype=act_dtype),
        out_shape=jax.ShapeDtypeStruct((B_pad, out_pad), jnp.float32),
        grid=(B_pad // tb,),
        in_specs=in_specs,
        out_specs=out_spec,
        compiler_params=pltpu.CompilerParams(dimension_semantics=("parallel",)),
        cost_estimate=cost,
    )(xb, *weights)

    return out[:B, :output_size]


def init_params(key, input_size, output_size):
    """Deterministic init matching LengthEstimator.__init_weights (f32 reference params):
    Linear weights ~ N(0, 0.02) (stored pre-transposed as (in, out)), biases 0,
    LayerNorm weight=1, bias=0."""
    ks = jax.random.split(key, 4)
    std = 0.02

    def linear_w(k, n_in, n_out):
        w = std * jax.random.normal(k, (n_out, n_in), dtype=jnp.float32)  # torch (out,in)
        return jnp.transpose(w)                                           # -> (in,out)

    return {
        "w1": linear_w(ks[0], input_size, ND),
        "b1": jnp.zeros((1, ND), jnp.float32),
        "g1": jnp.ones((1, ND), jnp.float32),
        "be1": jnp.zeros((1, ND), jnp.float32),
        "w2": linear_w(ks[1], ND, ND // 2),
        "b2": jnp.zeros((1, ND // 2), jnp.float32),
        "g2": jnp.ones((1, ND // 2), jnp.float32),
        "be2": jnp.zeros((1, ND // 2), jnp.float32),
        "w3": linear_w(ks[2], ND // 2, ND // 4),
        "b3": jnp.zeros((1, ND // 4), jnp.float32),
        "g3": jnp.ones((1, ND // 4), jnp.float32),
        "be3": jnp.zeros((1, ND // 4), jnp.float32),
        "w4": linear_w(ks[3], ND // 4, output_size),
        "b4": jnp.zeros((1, output_size), jnp.float32),
    }


def pack_params(params, output_size):
    """Kernel-side params: bf16 weights, packed (bias,gamma,beta) per layer,
    lane-dense padded output head."""
    out_pad = _round_up(output_size, 128)
    w4p = jnp.zeros((ND // 4, out_pad), jnp.float32).at[:, :output_size].set(params["w4"])
    b4p = jnp.zeros((1, out_pad), jnp.float32).at[:, :output_size].set(params["b4"])
    return {
        "w1": params["w1"].astype(jnp.bfloat16),
        "p1": jnp.concatenate([params["b1"], params["g1"], params["be1"]], axis=0),
        "w2": params["w2"].astype(jnp.bfloat16),
        "p2": jnp.concatenate([params["b2"], params["g2"], params["be2"]], axis=0),
        "w3": params["w3"].astype(jnp.bfloat16),
        "p3": jnp.concatenate([params["b3"], params["g3"], params["be3"]], axis=0),
        "w4": w4p.astype(jnp.bfloat16),
        "b4": b4p,
        "output_size": output_size,
    }


def _layernorm_ref(h, gamma, beta):
    mu = jnp.mean(h, axis=-1, keepdims=True)
    var = jnp.mean((h - mu) * (h - mu), axis=-1, keepdims=True)
    return (h - mu) * jax.lax.rsqrt(var + LN_EPS) * gamma + beta


def reference_forward(x, params):
    """Pure-JAX f32 reference (eval mode: dropout = identity)."""
    h = x @ params["w1"] + params["b1"]
    h = _leaky_relu(_layernorm_ref(h, params["g1"], params["be1"]))
    h = h @ params["w2"] + params["b2"]
    h = _leaky_relu(_layernorm_ref(h, params["g2"], params["be2"]))
    h = h @ params["w3"] + params["b3"]
    h = _leaky_relu(_layernorm_ref(h, params["g3"], params["be3"]))
    return h @ params["w4"] + params["b4"]


if __name__ == "__main__":
    input_size = 32   # text embedding dim (small synthetic)
    output_size = 50  # number of length classes

    key = jax.random.PRNGKey(0)
    k_x, k_p = jax.random.split(key)

    params = init_params(k_p, input_size, output_size)
    kparams = pack_params(params, output_size)

    # Multi-tile path: B=16 -> tb=8, grid=(2,), "parallel" (exercises 2-TC sharding on v7x).
    B = 16
    x = jax.random.normal(k_x, (B, input_size), dtype=jnp.float32)
    out = jax.block_until_ready(length_estimator_forward(x, kparams))
    ref = reference_forward(x, params)
    np.testing.assert_allclose(np.asarray(out), np.asarray(ref), rtol=3e-2, atol=3e-2)

    # Ragged batch path: B=13 padded to a multiple of TB inside the wrapper, sliced back.
    x2 = x[:13]
    out2 = jax.block_until_ready(length_estimator_forward(x2, kparams))
    ref2 = reference_forward(x2, params)
    np.testing.assert_allclose(np.asarray(out2), np.asarray(ref2), rtol=3e-2, atol=3e-2)

    print("KERNEL_OK")
</pallas_src>

<mosaic_0001>
module attributes {stable_mosaic.version = 11 : i64} {
  func.func @length_estimator_kernel(%arg0: i32, %arg1: memref<8x32xbf16, #tpu.memory_space<vmem>>, %arg2: memref<32x512xbf16, #tpu.memory_space<vmem>>, %arg3: memref<3x512xf32, #tpu.memory_space<vmem>>, %arg4: memref<512x256xbf16, #tpu.memory_space<vmem>>, %arg5: memref<3x256xf32, #tpu.memory_space<vmem>>, %arg6: memref<256x128xbf16, #tpu.memory_space<vmem>>, %arg7: memref<3x128xf32, #tpu.memory_space<vmem>>, %arg8: memref<128x128xbf16, #tpu.memory_space<vmem>>, %arg9: memref<1x128xf32, #tpu.memory_space<vmem>>, %arg10: memref<8x128xf32, #tpu.memory_space<vmem>>) attributes {dimension_semantics = [#tpu.dimension_semantics<parallel>], iteration_bounds = array<i64: 2>, scalar_prefetch = 0 : i64, scratch_operands = 0 : i64, tpu.core_type = #tpu.core_type<tc>, window_params = [{transform_indices = @transform_0, window_bounds = array<i64: 8, 32>}, {pipeline_mode = #tpu.pipeline_mode<synchronous>, transform_indices = @transform_1, window_bounds = array<i64: 32, 512>}, {pipeline_mode = #tpu.pipeline_mode<synchronous>, transform_indices = @transform_2, window_bounds = array<i64: 3, 512>}, {pipeline_mode = #tpu.pipeline_mode<synchronous>, transform_indices = @transform_3, window_bounds = array<i64: 512, 256>}, {pipeline_mode = #tpu.pipeline_mode<synchronous>, transform_indices = @transform_4, window_bounds = array<i64: 3, 256>}, {pipeline_mode = #tpu.pipeline_mode<synchronous>, transform_indices = @transform_5, window_bounds = array<i64: 256, 128>}, {pipeline_mode = #tpu.pipeline_mode<synchronous>, transform_indices = @transform_6, window_bounds = array<i64: 3, 128>}, {pipeline_mode = #tpu.pipeline_mode<synchronous>, transform_indices = @transform_7, window_bounds = array<i64: 128, 128>}, {pipeline_mode = #tpu.pipeline_mode<synchronous>, transform_indices = @transform_8, window_bounds = array<i64: 1, 128>}, {transform_indices = @transform_9, window_bounds = array<i64: 8, 128>}]} {
    %c0 = arith.constant 0 : index
    %c0_0 = arith.constant 0 : index
    %0 = vector.load %arg1[%c0, %c0_0] : memref<8x32xbf16, #tpu.memory_space<vmem>>, vector<8x32xbf16>
    %c0_1 = arith.constant 0 : index
    %c0_2 = arith.constant 0 : index
    %1 = vector.load %arg3[%c0_1, %c0_2] : memref<3x512xf32, #tpu.memory_space<vmem>>, vector<3x512xf32>
    %c0_3 = arith.constant 0 : index
    %c0_4 = arith.constant 0 : index
    %2 = vector.load %arg2[%c0_3, %c0_4] : memref<32x512xbf16, #tpu.memory_space<vmem>>, vector<32x512xbf16>
    %cst = arith.constant dense<0.000000e+00> : vector<8x512xf32>
    %3 = tpu.matmul %0, %2, %cst {dimension_numbers = #tpu.dot_dimension_numbers<[1], [0], [0], [1], [0, 0, 1, 1], [], []>} : vector<8x32xbf16>, vector<32x512xbf16>, vector<8x512xf32> -> vector<8x512xf32>
    %4 = vector.extract_strided_slice %1 {offsets = [0, 0], sizes = [1, 512], strides = [1, 1]} : vector<3x512xf32> to vector<1x512xf32>
    %5 = vector.broadcast %4 : vector<1x512xf32> to vector<8x512xf32>
    %6 = arith.addf %3, %5 : vector<8x512xf32>
    %cst_5 = arith.constant dense<0.000000e+00> : vector<8xf32>
    %7 = vector.multi_reduction <add>, %6, %cst_5 [1] : vector<8x512xf32> to vector<8xf32>
    %8 = vector.shape_cast %7 : vector<8xf32> to vector<8x1xf32>
    %cst_6 = arith.constant 5.120000e+02 : f32
    %9 = vector.broadcast %cst_6 : f32 to vector<8x1xf32>
    %10 = arith.divf %8, %9 : vector<8x1xf32>
    %11 = arith.mulf %6, %6 : vector<8x512xf32>
    %cst_7 = arith.constant dense<0.000000e+00> : vector<8xf32>
    %12 = vector.multi_reduction <add>, %11, %cst_7 [1] : vector<8x512xf32> to vector<8xf32>
    %13 = vector.shape_cast %12 : vector<8xf32> to vector<8x1xf32>
    %cst_8 = arith.constant 5.120000e+02 : f32
    %14 = vector.broadcast %cst_8 : f32 to vector<8x1xf32>
    %15 = arith.divf %13, %14 : vector<8x1xf32>
    %16 = arith.mulf %10, %10 : vector<8x1xf32>
    %17 = arith.subf %15, %16 : vector<8x1xf32>
    %cst_9 = arith.constant 0.000000e+00 : f32
    %18 = vector.broadcast %cst_9 : f32 to vector<8x1xf32>
    %19 = arith.maximumf %17, %18 : vector<8x1xf32>
    %cst_10 = arith.constant 9.99999974E-6 : f32
    %20 = vector.broadcast %cst_10 : f32 to vector<8x1xf32>
    %21 = arith.addf %19, %20 : vector<8x1xf32>
    %22 = math.rsqrt %21 : vector<8x1xf32>
    %23 = arith.truncf %6 : vector<8x512xf32> to vector<8x512xbf16>
    %24 = arith.truncf %10 : vector<8x1xf32> to vector<8x1xbf16>
    %25 = vector.broadcast %24 : vector<8x1xbf16> to vector<8x512xbf16>
    %26 = arith.subf %23, %25 : vector<8x512xbf16>
    %27 = arith.truncf %22 : vector<8x1xf32> to vector<8x1xbf16>
    %28 = vector.broadcast %27 : vector<8x1xbf16> to vector<8x512xbf16>
    %29 = arith.mulf %26, %28 : vector<8x512xbf16>
    %30 = vector.extract_strided_slice %1 {offsets = [1, 0], sizes = [1, 512], strides = [1, 1]} : vector<3x512xf32> to vector<1x512xf32>
    %31 = arith.truncf %30 : vector<1x512xf32> to vector<1x512xbf16>
    %32 = vector.broadcast %31 : vector<1x512xbf16> to vector<8x512xbf16>
    %33 = arith.mulf %29, %32 : vector<8x512xbf16>
    %34 = vector.extract_strided_slice %1 {offsets = [2, 0], sizes = [1, 512], strides = [1, 1]} : vector<3x512xf32> to vector<1x512xf32>
    %35 = arith.truncf %34 : vector<1x512xf32> to vector<1x512xbf16>
    %36 = vector.broadcast %35 : vector<1x512xbf16> to vector<8x512xbf16>
    %37 = arith.addf %33, %36 : vector<8x512xbf16>
    %cst_11 = arith.constant 0.000000e+00 : bf16
    %38 = vector.broadcast %cst_11 : bf16 to vector<8x512xbf16>
    %39 = arith.cmpf ogt, %37, %38 : vector<8x512xbf16>
    %cst_12 = arith.constant 2.001950e-01 : bf16
    %40 = vector.broadcast %cst_12 : bf16 to vector<8x512xbf16>
    %41 = arith.mulf %40, %37 : vector<8x512xbf16>
    %42 = arith.select %39, %37, %41 : vector<8x512xi1>, vector<8x512xbf16>
    %c0_13 = arith.constant 0 : index
    %c0_14 = arith.constant 0 : index
    %43 = vector.load %arg5[%c0_13, %c0_14] : memref<3x256xf32, #tpu.memory_space<vmem>>, vector<3x256xf32>
    %c0_15 = arith.constant 0 : index
    %c0_16 = arith.constant 0 : index
    %44 = vector.load %arg4[%c0_15, %c0_16] : memref<512x256xbf16, #tpu.memory_space<vmem>>, vector<512x256xbf16>
    %cst_17 = arith.constant dense<0.000000e+00> : vector<8x256xf32>
    %45 = tpu.matmul %42, %44, %cst_17 {dimension_numbers = #tpu.dot_dimension_numbers<[1], [0], [0], [1], [0, 0, 1, 1], [], []>} : vector<8x512xbf16>, vector<512x256xbf16>, vector<8x256xf32> -> vector<8x256xf32>
    %46 = vector.extract_strided_slice %43 {offsets = [0, 0], sizes = [1, 256], strides = [1, 1]} : vector<3x256xf32> to vector<1x256xf32>
    %47 = vector.broadcast %46 : vector<1x256xf32> to vector<8x256xf32>
    %48 = arith.addf %45, %47 : vector<8x256xf32>
    %cst_18 = arith.constant dense<0.000000e+00> : vector<8xf32>
    %49 = vector.multi_reduction <add>, %48, %cst_18 [1] : vector<8x256xf32> to vector<8xf32>
    %50 = vector.shape_cast %49 : vector<8xf32> to vector<8x1xf32>
    %cst_19 = arith.constant 2.560000e+02 : f32
    %51 = vector.broadcast %cst_19 : f32 to vector<8x1xf32>
    %52 = arith.divf %50, %51 : vector<8x1xf32>
    %53 = arith.mulf %48, %48 : vector<8x256xf32>
    %cst_20 = arith.constant dense<0.000000e+00> : vector<8xf32>
    %54 = vector.multi_reduction <add>, %53, %cst_20 [1] : vector<8x256xf32> to vector<8xf32>
    %55 = vector.shape_cast %54 : vector<8xf32> to vector<8x1xf32>
    %cst_21 = arith.constant 2.560000e+02 : f32
    %56 = vector.broadcast %cst_21 : f32 to vector<8x1xf32>
    %57 = arith.divf %55, %56 : vector<8x1xf32>
    %58 = arith.mulf %52, %52 : vector<8x1xf32>
    %59 = arith.subf %57, %58 : vector<8x1xf32>
    %cst_22 = arith.constant 0.000000e+00 : f32
    %60 = vector.broadcast %cst_22 : f32 to vector<8x1xf32>
    %61 = arith.maximumf %59, %60 : vector<8x1xf32>
    %cst_23 = arith.constant 9.99999974E-6 : f32
    %62 = vector.broadcast %cst_23 : f32 to vector<8x1xf32>
    %63 = arith.addf %61, %62 : vector<8x1xf32>
    %64 = math.rsqrt %63 : vector<8x1xf32>
    %65 = arith.truncf %48 : vector<8x256xf32> to vector<8x256xbf16>
    %66 = arith.truncf %52 : vector<8x1xf32> to vector<8x1xbf16>
    %67 = vector.broadcast %66 : vector<8x1xbf16> to vector<8x256xbf16>
    %68 = arith.subf %65, %67 : vector<8x256xbf16>
    %69 = arith.truncf %64 : vector<8x1xf32> to vector<8x1xbf16>
    %70 = vector.broadcast %69 : vector<8x1xbf16> to vector<8x256xbf16>
    %71 = arith.mulf %68, %70 : vector<8x256xbf16>
    %72 = vector.extract_strided_slice %43 {offsets = [1, 0], sizes = [1, 256], strides = [1, 1]} : vector<3x256xf32> to vector<1x256xf32>
    %73 = arith.truncf %72 : vector<1x256xf32> to vector<1x256xbf16>
    %74 = vector.broadcast %73 : vector<1x256xbf16> to vector<8x256xbf16>
    %75 = arith.mulf %71, %74 : vector<8x256xbf16>
    %76 = vector.extract_strided_slice %43 {offsets = [2, 0], sizes = [1, 256], strides = [1, 1]} : vector<3x256xf32> to vector<1x256xf32>
    %77 = arith.truncf %76 : vector<1x256xf32> to vector<1x256xbf16>
    %78 = vector.broadcast %77 : vector<1x256xbf16> to vector<8x256xbf16>
    %79 = arith.addf %75, %78 : vector<8x256xbf16>
    %cst_24 = arith.constant 0.000000e+00 : bf16
    %80 = vector.broadcast %cst_24 : bf16 to vector<8x256xbf16>
    %81 = arith.cmpf ogt, %79, %80 : vector<8x256xbf16>
    %cst_25 = arith.constant 2.001950e-01 : bf16
    %82 = vector.broadcast %cst_25 : bf16 to vector<8x256xbf16>
    %83 = arith.mulf %82, %79 : vector<8x256xbf16>
    %84 = arith.select %81, %79, %83 : vector<8x256xi1>, vector<8x256xbf16>
    %c0_26 = arith.constant 0 : index
    %c0_27 = arith.constant 0 : index
    %85 = vector.load %arg7[%c0_26, %c0_27] : memref<3x128xf32, #tpu.memory_space<vmem>>, vector<3x128xf32>
    %c0_28 = arith.constant 0 : index
    %c0_29 = arith.constant 0 : index
    %86 = vector.load %arg6[%c0_28, %c0_29] : memref<256x128xbf16, #tpu.memory_space<vmem>>, vector<256x128xbf16>
    %cst_30 = arith.constant dense<0.000000e+00> : vector<8x128xf32>
    %87 = tpu.matmul %84, %86, %cst_30 {dimension_numbers = #tpu.dot_dimension_numbers<[1], [0], [0], [1], [0, 0, 1, 1], [], []>} : vector<8x256xbf16>, vector<256x128xbf16>, vector<8x128xf32> -> vector<8x128xf32>
    %88 = vector.extract_strided_slice %85 {offsets = [0, 0], sizes = [1, 128], strides = [1, 1]} : vector<3x128xf32> to vector<1x128xf32>
    %89 = vector.broadcast %88 : vector<1x128xf32> to vector<8x128xf32>
    %90 = arith.addf %87, %89 : vector<8x128xf32>
    %cst_31 = arith.constant dense<0.000000e+00> : vector<8xf32>
    %91 = vector.multi_reduction <add>, %90, %cst_31 [1] : vector<8x128xf32> to vector<8xf32>
    %92 = vector.shape_cast %91 : vector<8xf32> to vector<8x1xf32>
    %cst_32 = arith.constant 1.280000e+02 : f32
    %93 = vector.broadcast %cst_32 : f32 to vector<8x1xf32>
    %94 = arith.divf %92, %93 : vector<8x1xf32>
    %95 = arith.mulf %90, %90 : vector<8x128xf32>
    %cst_33 = arith.constant dense<0.000000e+00> : vector<8xf32>
    %96 = vector.multi_reduction <add>, %95, %cst_33 [1] : vector<8x128xf32> to vector<8xf32>
    %97 = vector.shape_cast %96 : vector<8xf32> to vector<8x1xf32>
    %cst_34 = arith.constant 1.280000e+02 : f32
    %98 = vector.broadcast %cst_34 : f32 to vector<8x1xf32>
    %99 = arith.divf %97, %98 : vector<8x1xf32>
    %100 = arith.mulf %94, %94 : vector<8x1xf32>
    %101 = arith.subf %99, %100 : vector<8x1xf32>
    %cst_35 = arith.constant 0.000000e+00 : f32
    %102 = vector.broadcast %cst_35 : f32 to vector<8x1xf32>
    %103 = arith.maximumf %101, %102 : vector<8x1xf32>
    %cst_36 = arith.constant 9.99999974E-6 : f32
    %104 = vector.broadcast %cst_36 : f32 to vector<8x1xf32>
    %105 = arith.addf %103, %104 : vector<8x1xf32>
    %106 = math.rsqrt %105 : vector<8x1xf32>
    %107 = arith.truncf %90 : vector<8x128xf32> to vector<8x128xbf16>
    %108 = arith.truncf %94 : vector<8x1xf32> to vector<8x1xbf16>
    %109 = vector.broadcast %108 : vector<8x1xbf16> to vector<8x128xbf16>
    %110 = arith.subf %107, %109 : vector<8x128xbf16>
    %111 = arith.truncf %106 : vector<8x1xf32> to vector<8x1xbf16>
    %112 = vector.broadcast %111 : vector<8x1xbf16> to vector<8x128xbf16>
    %113 = arith.mulf %110, %112 : vector<8x128xbf16>
    %114 = vector.extract_strided_slice %85 {offsets = [1, 0], sizes = [1, 128], strides = [1, 1]} : vector<3x128xf32> to vector<1x128xf32>
    %115 = arith.truncf %114 : vector<1x128xf32> to vector<1x128xbf16>
    %116 = vector.broadcast %115 : vector<1x128xbf16> to vector<8x128xbf16>
    %117 = arith.mulf %113, %116 : vector<8x128xbf16>
    %118 = vector.extract_strided_slice %85 {offsets = [2, 0], sizes = [1, 128], strides = [1, 1]} : vector<3x128xf32> to vector<1x128xf32>
    %119 = arith.truncf %118 : vector<1x128xf32> to vector<1x128xbf16>
    %120 = vector.broadcast %119 : vector<1x128xbf16> to vector<8x128xbf16>
    %121 = arith.addf %117, %120 : vector<8x128xbf16>
    %cst_37 = arith.constant 0.000000e+00 : bf16
    %122 = vector.broadcast %cst_37 : bf16 to vector<8x128xbf16>
    %123 = arith.cmpf ogt, %121, %122 : vector<8x128xbf16>
    %cst_38 = arith.constant 2.001950e-01 : bf16
    %124 = vector.broadcast %cst_38 : bf16 to vector<8x128xbf16>
    %125 = arith.mulf %124, %121 : vector<8x128xbf16>
    %126 = arith.select %123, %121, %125 : vector<8x128xi1>, vector<8x128xbf16>
    %c0_39 = arith.constant 0 : index
    %c0_40 = arith.constant 0 : index
    %127 = vector.load %arg8[%c0_39, %c0_40] : memref<128x128xbf16, #tpu.memory_space<vmem>>, vector<128x128xbf16>
    %cst_41 = arith.constant dense<0.000000e+00> : vector<8x128xf32>
    %128 = tpu.matmul %126, %127, %cst_41 {dimension_numbers = #tpu.dot_dimension_numbers<[1], [0], [0], [1], [0, 0, 1, 1], [], []>} : vector<8x128xbf16>, vector<128x128xbf16>, vector<8x128xf32> -> vector<8x128xf32>
    %c0_42 = arith.constant 0 : index
    %c0_43 = arith.constant 0 : index
    %129 = vector.load %arg9[%c0_42, %c0_43] : memref<1x128xf32, #tpu.memory_space<vmem>>, vector<1x128xf32>
    %130 = vector.broadcast %129 : vector<1x128xf32> to vector<8x128xf32>
    %131 = arith.addf %128, %130 : vector<8x128xf32>
    %c0_44 = arith.constant 0 : index
    %c0_45 = arith.constant 0 : index
    %132 = vector.load %arg10[%c0_44, %c0_45] : memref<8x128xf32, #tpu.memory_space<vmem>>, vector<8x128xf32>
    tpu.vector_store %arg10[%c0_44, %c0_45], %131 {strides = array<i32>} : memref<8x128xf32, #tpu.memory_space<vmem>>, vector<8x128xf32>,
    return
  }
  func.func @transform_0(%arg0: i32) -> (i32, i32) {
    %c0_i32 = arith.constant 0 : i32
    %c0_i32_0 = arith.constant 0 : i32
    return %arg0, %c0_i32 : i32, i32
  }
  func.func @transform_1(%arg0: i32) -> (i32, i32) {
    %c0_i32 = arith.constant 0 : i32
    %c0_i32_0 = arith.constant 0 : i32
    %c0_i32_1 = arith.constant 0 : i32
    return %c0_i32, %c0_i32_0 : i32, i32
  }
  func.func @transform_2(%arg0: i32) -> (i32, i32) {
    %c0_i32 = arith.constant 0 : i32
    %c0_i32_0 = arith.constant 0 : i32
    %c0_i32_1 = arith.constant 0 : i32
    return %c0_i32, %c0_i32_0 : i32, i32
  }
  func.func @transform_3(%arg0: i32) -> (i32, i32) {
    %c0_i32 = arith.constant 0 : i32
    %c0_i32_0 = arith.constant 0 : i32
    %c0_i32_1 = arith.constant 0 : i32
    return %c0_i32, %c0_i32_0 : i32, i32
  }
  func.func @transform_4(%arg0: i32) -> (i32, i32) {
    %c0_i32 = arith.constant 0 : i32
    %c0_i32_0 = arith.constant 0 : i32
    %c0_i32_1 = arith.constant 0 : i32
    return %c0_i32, %c0_i32_0 : i32, i32
  }
  func.func @transform_5(%arg0: i32) -> (i32, i32) {
    %c0_i32 = arith.constant 0 : i32
    %c0_i32_0 = arith.constant 0 : i32
    %c0_i32_1 = arith.constant 0 : i32
    return %c0_i32, %c0_i32_0 : i32, i32
  }
  func.func @transform_6(%arg0: i32) -> (i32, i32) {
    %c0_i32 = arith.constant 0 : i32
    %c0_i32_0 = arith.constant 0 : i32
    %c0_i32_1 = arith.constant 0 : i32
    return %c0_i32, %c0_i32_0 : i32, i32
  }
  func.func @transform_7(%arg0: i32) -> (i32, i32) {
    %c0_i32 = arith.constant 0 : i32
    %c0_i32_0 = arith.constant 0 : i32
    %c0_i32_1 = arith.constant 0 : i32
    return %c0_i32, %c0_i32_0 : i32, i32
  }
  func.func @transform_8(%arg0: i32) -> (i32, i32) {
    %c0_i32 = arith.constant 0 : i32
    %c0_i32_0 = arith.constant 0 : i32
    %c0_i32_1 = arith.constant 0 : i32
    return %c0_i32, %c0_i32_0 : i32, i32
  }
  func.func @transform_9(%arg0: i32) -> (i32, i32) {
    %c0_i32 = arith.constant 0 : i32
    %c0_i32_0 = arith.constant 0 : i32
    return %arg0, %c0_i32 : i32, i32
  }
}

</mosaic_0001>

<bundles_post_ra>
// kernel: tpu_custom_call.1
= control target key start
LH: loop header
LB: loop body
LE: loop exit
PB: predicated region body
PF: predicated region fallthrough
CT: control target
= control target key end

     0   :  { %s2959_s0 = inlined_call_operand.hbm [shape: bf16[16,32], index: 0, kind: input, shape index: {}]   ;;  %s2960_s1 = inlined_call_operand.hbm [shape: bf16[32,512], index: 1, kind: input, shape index: {}]   ;;  %s2961_s2 = inlined_call_operand.hbm [shape: f32[3,512], index: 2, kind: input, shape index: {}]   ;;  %s2962_s3 = inlined_call_operand.hbm [shape: bf16[512,256], index: 3, kind: input, shape index: {}]   ;;  %s2963_s4 = inlined_call_operand.vmem [shape: f32[3,256], index: 4, kind: input, shape index: {}]   ;;  %s2964_s5 = inlined_call_operand.hbm [shape: bf16[256,128], index: 5, kind: input, shape index: {}]   ;;  %s2965_s6 = inlined_call_operand.vmem [shape: f32[3,128], index: 6, kind: input, shape index: {}]   ;;  %s2966_s7 = inlined_call_operand.hbm [shape: bf16[128,128], index: 7, kind: input, shape index: {}]   ;;  %s2967_s8 = inlined_call_operand.vmem [shape: f32[1,128], index: 8, kind: input, shape index: {}]   ;;  %s2968_s9 = inlined_call_operand.hbm [shape: f32[16,128], index: 9, kind: output, shape index: {}]  }
   0x1   :  { %2973 = sst [smem:[#allocation19_spill]] %s2968_s9 }
   0x2   :  { %14 = vsyncpa [#allocation3], 0 }
   0x3   :  { %16 = vsyncpa [#allocation3 + $0x1], 0 }
   0x4   :  { %17 = vsyncpa [#allocation6], 0 }
   0x5   :  { %18 = vsyncpa [#allocation9], 0 }
   0x6   :  { %19 = vsyncpa [#allocation12], 0 }
   0x7   :  { %20 = vsyncpa [#allocation4], 0 }
   0x8   :  { %22 = vsyncpa [#allocation4 + $0x1], 0  ;;  %s2527_s30 = smov 0   ;;  %s2529_s10 = smov 0  }
   0x9   :  { %s2531_s11 = smov 0   ;;  %s2533_s12 = smov 0  }
   0xa LB: > { %s2461_s13 = smov [#allocation5]   ;;  %s2548_s15 = sadd.s32 4294967295, %s2459_s12   ;;  %s2459_s12 = sphi %s2533_s12, %s2996_s12   ;;  %s2455_s11 = sphi %s2531_s11, %s2995_s11   ;;  %s2451_s10 = sphi %s2529_s10, %s2994_s10   ;;  %s2447_s30 = sphi %s2527_s30, %s2993_s30  }
   0xb   : > { %s265_s14 = sshll.u32 %s2461_s13, 4  ;;  %p1790_p0 = scmp.ge.s32.totalorder %s2459_s12, 1  ;;  %s2553_s14 = int_to_ptr.vmem [resolvable:$true] %s265_s14 }
   0xc   : > { %p2970_p1 = scmp.eq.s32.totalorder %s2548_s15, 0  ;;  %p253_p2 = scmp.lt.s32.totalorder %s2459_s12, 3 }
   0xd   : > { %s2462_s17 = smov [#allocation8]   ;;  %s2463_s20 = smov [#allocation7]  }
   0xe   : > { %p2555_p3 = pnand %p1790_p0, %p253_p2  ;;  %s289_s18 = sshll.u32 %s2462_s17, 4  ;;  %s2568_s18 = int_to_ptr.vmem [resolvable:$true] %s289_s18 }
   0xf   : > { %s2570_s21 = sshll.u32 %s2463_s20, 4  ;;  %s2211_s24 = scalar_lea.hbm %s2960_s1, 1024  ;;  %s280_s21 = int_to_ptr.vmem [resolvable:$true] %s2570_s21 }
  0x10   : > { %s2974_s16 = scalar_select %p2555_p3, 1, 0 }
  0x11   : > { %p1991_p5 = pneg %p2555_p3  ;;  %p2212_p7 = scmp.ne.s32.totalorder %s2960_s1, %s2211_s24 }
  0x12   : > { %p2218_p11 = scmp.lt.u32.totalorder %s2211_s24, %s2960_s1 }
  0x13   : > { %p2564_p6 = pnand %p1991_p5, %p2970_p1 }
  0x15   : > { %p2580_p8 = pneg %p2564_p6 }
  0x17   : > { %p2214_p9 = pnand %p2580_p8, %p2212_p7 }
  0x19   : > { %p2215_p10 = pneg %p2214_p9 }
  0x1b   : > { %p2220_p12 = pnand %p2218_p11, %p2215_p10 }
  0x1d   : > { %2223 = shalt.err (!%p2220_p12)
}
  0x1e   : > { %s2224_s13 = scalar_lea.vmem %s2553_s14, 1024  ;;  %p2232_p5 = scmp.lt.s32.totalorder %s2553_s14, %s2553_s14 }
  0x1f   : > { %p2225_p13 = scmp.ne.s32.totalorder %s2553_s14, %s2224_s13  ;;  %p2233_p4 = scmp.lt.s32.totalorder %s2224_s13, %s2224_s13 }
  0x21   : > { %p2227_p0 = pnand %p2225_p13, %p2580_p8  ;;  %p2234_p7 = por %p2233_p4, %p2232_p5 }
  0x23   : > { %p2228_p2 = pneg %p2227_p0 }
  0x25   : > { %p2235_p9 = pnand %p2234_p7, %p2228_p2 }
  0x27   : > { %2238 = shalt.err (!%p2235_p9)
}
  0x28   : > { %s2464_s17 = smov 256   ;;  %s2465_s20 = smov 16  }
  0x29   : > { %1994 = dma.hbm_to_vmem [thread:$0]  (!%p2564_p6), %s2960_s1, 1024, %s2553_s14, [#allocation6], %s2464_s17, %s2464_s17, %s2465_s20  }
  0x2a   : > { %s2239_s26 = scalar_lea.hbm %s2962_s3, 8192 }
  0x2b   : > { %p2240_p4 = scmp.ne.s32.totalorder %s2962_s3, %s2239_s26  ;;  %p2246_p12 = scmp.lt.u32.totalorder %s2239_s26, %s2962_s3 }
  0x2d   : > { %p2242_p10 = pnand %p2240_p4, %p2580_p8 }
  0x2f   : > { %p2243_p11 = pneg %p2242_p10 }
  0x31   : > { %p2248_p13 = pnand %p2246_p12, %p2243_p11 }
  0x33   : > { %2251 = shalt.err (!%p2248_p13)
}
  0x34   : > { %s2252_s14 = scalar_lea.vmem %s2568_s18, 8192  ;;  %p2260_p7 = scmp.lt.s32.totalorder %s2568_s18, %s2568_s18 }
  0x35   : > { %p2253_p0 = scmp.ne.s32.totalorder %s2568_s18, %s2252_s14  ;;  %p2261_p9 = scmp.lt.s32.totalorder %s2252_s14, %s2252_s14 }
  0x37   : > { %p2255_p2 = pnand %p2253_p0, %p2580_p8  ;;  %p2262_p4 = por %p2261_p9, %p2260_p7 }
  0x39   : > { %p2256_p5 = pneg %p2255_p2 }
  0x3b   : > { %p2263_p10 = pnand %p2262_p4, %p2256_p5 }
  0x3d   : > { %2266 = shalt.err (!%p2263_p10)
}
  0x3e   : > { %s2466_s17 = smov 128   ;;  %s2467_s9 = smov 8  }
  0x3f   : > { %2000 = dma.hbm_to_vmem [thread:$0]  (!%p2564_p6), %s2962_s3, 8192, %s2568_s18, [#allocation9], %s2466_s17, %s2466_s17, %s2467_s9  }
  0x40   : > { %s2267_s25 = scalar_lea.hbm %s2961_s2, 256 }
  0x41   : > { %p2268_p11 = scmp.ne.s32.totalorder %s2961_s2, %s2267_s25  ;;  %p2274_p0 = scmp.lt.u32.totalorder %s2267_s25, %s2961_s2 }
  0x43   : > { %p2270_p12 = pnand %p2268_p11, %p2580_p8 }
  0x45   : > { %p2271_p13 = pneg %p2270_p12 }
  0x47   : > { %p2276_p2 = pnand %p2274_p0, %p2271_p13 }
  0x49   : > { %2279 = shalt.err (!%p2276_p2)
}
  0x4a   : > { %s2280_s14 = scalar_lea.vmem %s280_s21, 256  ;;  %p2288_p4 = scmp.lt.s32.totalorder %s280_s21, %s280_s21 }
  0x4b   : > { %p2281_p5 = scmp.ne.s32.totalorder %s280_s21, %s2280_s14  ;;  %p2289_p10 = scmp.lt.s32.totalorder %s2280_s14, %s2280_s14 }
  0x4d   : > { %p2283_p7 = pnand %p2281_p5, %p2580_p8  ;;  %p2290_p1 = por %p2289_p10, %p2288_p4 }
  0x4f   : > { %p2284_p9 = pneg %p2283_p7 }
  0x51   : > { %p2291_p3 = pnand %p2290_p1, %p2284_p9 }
  0x53   : > { %2294 = shalt.err (!%p2291_p3)
}
  0x54   : > { %1997 = dma.hbm_to_vmem [thread:$0]  (!%p2564_p6), %s2961_s2, 256, %s280_s21, [#allocation6]  }
  0x55   : > { %s2468_s9 = smov [#allocation10]   ;;  %s2295_s24 = scalar_lea.hbm %s2964_s5, 2048 }
  0x56   : > { %s305_s20 = sshll.u32 %s2468_s9, 4  ;;  %p2296_p11 = scmp.ne.s32.totalorder %s2964_s5, %s2295_s24  ;;  %s306_s20 = int_to_ptr.vmem [resolvable:$true] %s305_s20 }
  0x57   : > { %p2302_p12 = scmp.lt.u32.totalorder %s2295_s24, %s2964_s5 }
  0x58   : > { %p2298_p1 = pnand %p2296_p11, %p2580_p8 }
  0x5a   : > { %p2299_p3 = pneg %p2298_p1 }
  0x5c   : > { %p2304_p13 = pnand %p2302_p12, %p2299_p3 }
  0x5e   : > { %2307 = shalt.err (!%p2304_p13)
}
  0x5f   : > { %s2308_s21 = scalar_lea.vmem %s306_s20, 2048  ;;  %p2316_p7 = scmp.lt.s32.totalorder %s306_s20, %s306_s20 }
  0x60   : > { %p2309_p0 = scmp.ne.s32.totalorder %s306_s20, %s2308_s21  ;;  %p2317_p9 = scmp.lt.s32.totalorder %s2308_s21, %s2308_s21 }
  0x62   : > { %p2311_p2 = pnand %p2309_p0, %p2580_p8  ;;  %p2318_p4 = por %p2317_p9, %p2316_p7 }
  0x64   : > { %p2312_p5 = pneg %p2311_p2 }
  0x66   : > { %p2319_p10 = pnand %p2318_p4, %p2312_p5 }
  0x68   : > { %2322 = shalt.err (!%p2319_p10)
}
  0x69   : > { %s2469_s13 = smov 64   ;;  %s2470_s14 = smov 4  }
  0x6a   : > { %2003 = dma.hbm_to_vmem [thread:$0]  (!%p2564_p6), %s2964_s5, 2048, %s306_s20, [#allocation9], %s2469_s13, %s2469_s13, %s2470_s14  }
  0x6b   : > { %s2471_s9 = smov [#allocation11]   ;;  %s2323_s25 = scalar_lea.hbm %s2966_s7, 1024 }
  0x6c   : > { %s321_s22 = sshll.u32 %s2471_s9, 4  ;;  %p2324_p11 = scmp.ne.s32.totalorder %s2966_s7, %s2323_s25  ;;  %s322_s22 = int_to_ptr.vmem [resolvable:$true] %s321_s22 }
  0x6d   : > { %p2330_p12 = scmp.lt.u32.totalorder %s2323_s25, %s2966_s7 }
  0x6e   : > { %p2326_p1 = pnand %p2324_p11, %p2580_p8 }
  0x70   : > { %p2327_p3 = pneg %p2326_p1 }
  0x72   : > { %p2332_p13 = pnand %p2330_p12, %p2327_p3 }
  0x74   : > { %2335 = shalt.err (!%p2332_p13)
}
  0x75   : > { %s2336_s20 = scalar_lea.vmem %s322_s22, 1024  ;;  %p2344_p7 = scmp.lt.s32.totalorder %s322_s22, %s322_s22 }
  0x76   : > { %p2337_p0 = scmp.ne.s32.totalorder %s322_s22, %s2336_s20  ;;  %p2345_p9 = scmp.lt.s32.totalorder %s2336_s20, %s2336_s20 }
  0x78   : > { %p2339_p2 = pnand %p2337_p0, %p2580_p8  ;;  %p2346_p4 = por %p2345_p9, %p2344_p7 }
  0x7a   : > { %p2340_p5 = pneg %p2339_p2 }
  0x7c   : > { %p2347_p10 = pnand %p2346_p4, %p2340_p5 }
  0x7e   : > { %2350 = shalt.err (!%p2347_p10)
}
  0x7f   : > { %2006 = dma.hbm_to_vmem [thread:$0]  (!%p2564_p6), %s2966_s7, 1024, %s322_s22, [#allocation12], %s2469_s13, %s2469_s13, %s2470_s14  }
  0x80   : > { %s1789_s27 = sadd.s32 4294967294, %s2459_s12   ;;  %s2681_s19 = sadd.s32 1, %s2459_s12  }
  0x81   : > { %s35_s9 = sadd.s32 1, %s2455_s11  ;;  %s32_s23 = ssub.s32 %s2459_s12, %s2681_s19 }
  0x82   : > { %p42_p8 = scmp.ne.s32.totalorder %s2455_s11, %s2451_s10  ;;  %p33_p11 = scmp.eq.s32.totalorder %s32_s23, 0 }
  0x83   : > { %p43_p1 = scmp.eq.s32.totalorder %s2459_s12, 0  ;;  %p48_p3 = scmp.ne.s32.totalorder %s2451_s10, %s2447_s30 }
  0x84   : > { %p240_p12 = scmp.eq.s32.totalorder %s2548_s15, 1  ;;  %p2977_p0 = scmp.eq.s32.totalorder %s2548_s15, 0 }
  0x85   : > { %s2693_s24 = scalar_select %p33_p11, %s2455_s11, %s35_s9  }
  0x86   : > { %p44_p13 = por %p43_p1, %p42_p8  ;;  %p2697_p2 = por %p2977_p0, %p48_p3 }
  0x87   : > { %p2701_p6 = por %p240_p12, %p42_p8  ;;  %p246_p5 = scmp.eq.s32.totalorder %s1789_s27, 1 }
  0x88   : > { %p2020_p7 = scmp.lt.s32.totalorder %s2459_s12, 2  ;;  %s338_s14 = sand.u32 1, %s2455_s11  }
  0x89   : > { %s2979_s13 = scalar_select %p2701_p6, 1, 0 }
  0x8a   : > { %p2707_p9 = por %p246_p5, %p48_p3  ;;  %s1797_s26 = sshll.u32 %s338_s14, 2 }
  0x8b   : > { %s1798_s28 = sshll.u32 %s2459_s12, 6  ;;  %s342_s18 = scalar_lea.vmem [#allocation2], %s1797_s26 }
  0x8c   : > { %s2980_s22 = scalar_select %p2707_p9, 1, 0 }
  0x8d   : > { %s2715_s20 = scalar_lea.hbm %s2959_s0, %s1798_s28  ;;  %s349_s17 = sshll.u32 %s342_s18, 4  ;;  %s2721_s17 = int_to_ptr.vmem [resolvable:$true] %s349_s17 }
  0x8e   : > { %p2717_p4 = pnand %p2020_p7, %p44_p13  ;;  %s339_s9 = scalar_lea.sflag [#allocation3], %s338_s14 }
  0x8f   : > { %s2351_s23 = scalar_lea.hbm %s2715_s20, 64  ;;  %s2356_s29 = scalar_lea.hbm %s2959_s0, 128 }
  0x90   : > { %p2352_p10 = scmp.ne.s32.totalorder %s2715_s20, %s2351_s23  ;;  %p2353_p8 = pneg %p2717_p4 }
  0x91   : > { %p2357_p3 = scmp.lt.u32.totalorder %s2715_s20, %s2959_s0  ;;  %p2358_p12 = scmp.lt.u32.totalorder %s2356_s29, %s2351_s23 }
  0x92   : > { %p2354_p11 = pnand %p2353_p8, %p2352_p10  ;;  %p2360_p0 = scmp.lt.u32.totalorder %s2351_s23, %s2715_s20 }
  0x93   : > { %p2359_p13 = por %p2358_p12, %p2357_p3 }
  0x94   : > { %p2355_p1 = pneg %p2354_p11 }
  0x95   : > { %p2361_p5 = por %p2360_p0, %p2359_p13 }
  0x97   : > { %p2362_p7 = pnand %p2361_p5, %p2355_p1 }
  0x99   : > { %2365 = shalt.err (!%p2362_p7)
}
  0x9a   : > { %s2366_s14 = scalar_lea.vmem %s2721_s17, 64  ;;  %s2472_s28 = smov [#allocation2]  }
  0x9b   : > { %p2367_p10 = scmp.ne.s32.totalorder %s2721_s17, %s2366_s14  ;;  %s2371_s26 = sshll.u32 %s2472_s28, 4  ;;  %s2372_s26 = int_to_ptr.vmem [resolvable:$false] %s2371_s26 }
  0x9c   : > { %s2373_s21 = scalar_lea.vmem %s2372_s26, 128  ;;  %p2374_p6 = scmp.lt.s32.totalorder %s2721_s17, %s2372_s26 }
  0x9d   : > { %p2369_p11 = pnand %p2367_p10, %p2353_p8  ;;  %p2375_p3 = scmp.lt.s32.totalorder %s2373_s21, %s2366_s14 }
  0x9f   : > { %p2370_p9 = pneg %p2369_p11  ;;  %p2376_p12 = por %p2375_p3, %p2374_p6 }
  0xa1   : > { %p2377_p13 = pnand %p2376_p12, %p2370_p9 }
  0xa3   : > { %2380 = shalt.err (!%p2377_p13)
}
  0xa4   : > { %2010 = dma.hbm_to_vmem [thread:$0]  (!%p2717_p4), %s2715_s20, 64, %s2721_s17, %s339_s9  }
  0xa5   : > { %p2982_p1 = scmp.ne.s32.totalorder %s2974_s16, 0 }
  0xa6   : > { %s2751_s23 = sand.u32 (!%p2982_p1), 1, %s2451_s10  }
  0xa7   : > { %358 = sbr.rel (%p2982_p1) target bundleno = 1673 (0x689), region = 56  ;;  %s1800_s29 = sshll.u32 (!%p2982_p1), %s2751_s23, 2 }
  0xa8   : > { %s361_s18 = scalar_lea.sflag (!%p2982_p1), [#allocation3], %s2751_s23  ;;  %s364_s14 = scalar_lea.vmem (!%p2982_p1), [#allocation2], %s1800_s29 }
  0xae   : > { %2426 = dma.done.wait (%p2697_p2), %s361_s18, 64  }
  0xaf   : > { %2428 = vsyncadd (%p2697_p2), %s361_s18, 4294967232  ;;  %p2983_p6 = scmp.eq.s32.totalorder %s2548_s15, 0 }
  0xb1   : > { %2430 = dma.done.wait (%p2983_p6), [#allocation6], 1280   ;;  %p2984_p9 = pmov %p2983_p6 }
  0xb2   : > { %p2985_p4 = pmov %p2983_p6 }
  0xb3   : > { %2432 = vsyncadd (%p2984_p9), [#allocation6], 4294966016 }
  0xb4   : > { %2434 = dma.done.wait (%p2985_p4), [#allocation9], 10240   ;;  %p2986_p8 = pmov %p2985_p4 }
  0xb5   : > { %p2987_p0 = pmov %p2985_p4 }
  0xb6   : > { %2436 = vsyncadd (%p2986_p8), [#allocation9], 4294957056 }
  0xb7   : > { %2438 = dma.done.wait (%p2987_p0), [#allocation12], 1024   ;;  %p2988_p5 = pmov %p2987_p0 }
  0xb8   : > { %v2473_v0 = vmov 0   ;;  %v2073_v1 = vld [vmem:[#allocation5 + $0x4] ss:$16 sps:$4 sm:$0xff]   ;;  %v2075_v2 = vld [vmem:[#allocation5] ss:$16 sps:$4 sm:$0xff]   ;;  %vm510_vm0 = vcmask 261120   ;;  %v434_v26 = vlaneseq }
  0xb9   : > { %2440 = vsyncadd (%p2988_p5), [#allocation12], 4294966272  ;;  %546 = vmatprep.mubr.bf16.mxu1 %v2473_v0  ;;  %514 = vmatprep.subr.bf16.mxu1 %v2073_v1  ;;  %v2076_v3 = vld [vmem:[#allocation5 + $0x24] ss:$16 sps:$4 sm:$0xff]   ;;  %v2078_v4 = vld [vmem:[#allocation5 + $0x20] ss:$16 sps:$4 sm:$0xff]  }
  0xba   : > { %515 = vmatpush1.bf16.msra.mxu1 %v2075_v2  ;;  %v2081_v5 = vld [vmem:[#allocation5 + $0xc] ss:$16 sps:$4 sm:$0xff]   ;;  %v2079_v7 = vld [vmem:[#allocation5 + $0x8] ss:$16 sps:$4 sm:$0xff]   ;;  %v2771_v27 = vshrl.u32 %v434_v26, 7  ;;  %vm2475_vm7 = vmmov 0  }
  0xbb   : > { %516 = vmatprep.subr.bf16.mxu1 %v2076_v3  ;;  %v421_v6 = vld [vmem:[%s364_s14] sm:$0xf]  ;;  %v2088_v12 = vld [vmem:[#allocation8 + $0x14] ss:$8 sps:$4 sm:$0xff]   ;;  %v2090_v13 = vld [vmem:[#allocation8 + $0x10] ss:$8 sps:$4 sm:$0xff]  }
  0xbc   : > { %v2084_v8 = vld [vmem:[#allocation5 + $0x2c] ss:$16 sps:$4 sm:$0xff]   ;;  %v2082_v9 = vld [vmem:[#allocation5 + $0x28] ss:$16 sps:$4 sm:$0xff]   ;;  %v2774_v28 = vsub.s32 0, %v2771_v27  ;;  %v2779_v30 = vsub.s32 4, %v2771_v27 }
  0xbd   : > { %v2085_v10 = vld [vmem:[#allocation8 + $0x4] ss:$8 sps:$4 sm:$0xff]   ;;  %v2087_v11 = vld [vmem:[#allocation8] ss:$8 sps:$4 sm:$0xff]   ;;  %v2094_v16 = vld [vmem:[#allocation8 + $0x34] ss:$8 sps:$4 sm:$0xff]  }
  0xbe   : > { %517 = vmatpush1.bf16.msra.mxu1 %v2078_v4  ;;  %1164 = vmatprep.subr.bf16.mxu0 %v2085_v10  ;;  %v2091_v14 = vld [vmem:[#allocation8 + $0x24] ss:$8 sps:$4 sm:$0xff]   ;;  %v2093_v15 = vld [vmem:[#allocation8 + $0x20] ss:$8 sps:$4 sm:$0xff]   ;;  %v2096_v17 = vld [vmem:[#allocation8 + $0x30] ss:$8 sps:$4 sm:$0xff]  }
  0xbf   : > { %555 = vmatprep.subr.bf16.mxu1 %v2081_v5  ;;  %1165 = vmatpush1.bf16.msra.mxu0 %v2087_v11  ;;  %v2097_v18 = vld [vmem:[#allocation8 + $0x44] ss:$8 sps:$4 sm:$0xff]   ;;  %v2099_v19 = vld [vmem:[#allocation8 + $0x40] ss:$8 sps:$4 sm:$0xff]   ;;  %v2100_v20 = vld [vmem:[#allocation8 + $0x54] ss:$8 sps:$4 sm:$0xff]  }
  0xc0   : > { %1166 = vmatprep.subr.bf16.mxu0 %v2088_v12  ;;  %v2102_v21 = vld [vmem:[#allocation8 + $0x50] ss:$8 sps:$4 sm:$0xff]   ;;  %v2103_v22 = vld [vmem:[#allocation8 + $0x64] ss:$8 sps:$4 sm:$0xff]   ;;  %v2105_v23 = vld [vmem:[#allocation8 + $0x60] ss:$8 sps:$4 sm:$0xff]  }
  0xc1   : > { %1815 = vmatmul.mubr.msk.bf16.vlgmr.msra.gmra.mrb[0].mxu1 %vm510_vm0, %v421_v6  ;;  %v2106_v24 = vld [vmem:[#allocation8 + $0x74] ss:$8 sps:$4 sm:$0xff]   ;;  %v2108_v25 = vld [vmem:[#allocation8 + $0x70] ss:$8 sps:$4 sm:$0xff]   ;;  %v2109_v62 = vld [vmem:[#allocation8 + $0x84] ss:$8 sps:$4 sm:$0xff]  }
  0xc2   : > { %556 = vmatpush1.bf16.msra.mxu1 %v2079_v7  ;;  %587 = vmatprep.mubr.bf16.mxu1 %v2473_v0  ;;  %v2776_v29 = vld [vmem:[#allocation7] sm:$0x77]  ;;  %v2787_v35 = vld [vmem:[#allocation7 + $0x8] sm:$0x77]  ;;  %v2111_v63 = vld [vmem:[#allocation8 + $0x80] ss:$8 sps:$4 sm:$0xff]  }
  0xc3   : > { %557 = vmatprep.subr.bf16.mxu1 %v2084_v8  ;;  %1167 = vmatpush1.bf16.msra.mxu0 %v2090_v13  ;;  %v437_v31 = vrot.slane %v2776_v29, %v2774_v28  ;;  %v441_v32 = vrot.slane %v2776_v29, %v2779_v30  ;;  %v445_v39 = vrot.slane %v2787_v35, %v2774_v28  ;;  %v2112_v0 = vld [vmem:[#allocation8 + $0x94] ss:$8 sps:$4 sm:$0xff]   ;;  %v2114_v1 = vld [vmem:[#allocation8 + $0x90] ss:$8 sps:$4 sm:$0xff]   ;;  %v2115_v2 = vld [vmem:[#allocation8 + $0xa4] ss:$8 sps:$4 sm:$0xff]  }
  0xc4   : > { %1168 = vmatprep.subr.bf16.mxu0 %v2091_v14  ;;  %v449_v42 = vrot.slane %v2787_v35, %v2779_v30  ;;  %v2117_v3 = vld [vmem:[#allocation8 + $0xa0] ss:$8 sps:$4 sm:$0xff]   ;;  %v2118_v4 = vld [vmem:[#allocation8 + $0xb4] ss:$8 sps:$4 sm:$0xff]   ;;  %v2120_v5 = vld [vmem:[#allocation8 + $0xb0] ss:$8 sps:$4 sm:$0xff]  }
  0xc5   : > { %v457_v33 = vrot.slane %v437_v31, %v2774_v28  ;;  %v461_v34 = vrot.slane %v441_v32, %v2774_v28  ;;  %v465_v47 = vrot.slane %v445_v39, %v2774_v28  ;;  %v2123_v7 = vld [vmem:[#allocation8 + $0xc0] ss:$8 sps:$4 sm:$0xff]   ;;  %v2124_v8 = vld [vmem:[#allocation8 + $0xd4] ss:$8 sps:$4 sm:$0xff]   ;;  %v2127_v10 = vld [vmem:[#allocation8 + $0xe4] ss:$8 sps:$4 sm:$0xff]  }
  0xc6   : > { %558 = vmatpush1.bf16.msra.mxu1 %v2082_v9  ;;  %v469_v48 = vrot.slane %v449_v42, %v2774_v28  ;;  %v2126_v9 = vld [vmem:[#allocation8 + $0xd0] ss:$8 sps:$4 sm:$0xff]   ;;  %v2129_v11 = vld [vmem:[#allocation8 + $0xe0] ss:$8 sps:$4 sm:$0xff]   ;;  %v2130_v12 = vld [vmem:[#allocation8 + $0xf4] ss:$8 sps:$4 sm:$0xff]  }
  0xc7   : > { %1169 = vmatpush1.bf16.msra.mxu0 %v2093_v15  ;;  %v2132_v13 = vld [vmem:[#allocation8 + $0xf0] ss:$8 sps:$4 sm:$0xff]   ;;  %v2135_v14 = vld [vmem:[#allocation8 + $0x104] ss:$8 sps:$4 sm:$0xff]   ;;  %s1806_s27 = sshll.u32 %s2751_s23, 3  ;;  %s1907_s26 = sshll.u32 %s2548_s15, 7 }
  0xc8   : > { %1170 = vmatprep.subr.bf16.mxu0 %v2094_v16  ;;  %s418_s21 = scalar_lea.vmem [#allocation13], %s1806_s27  ;;  %s2989_s16 = sld [smem:[#allocation19_spill]] }
  0xc9   : > { %1816 = vmatmul.mubr.msk.bf16.vlgmr.msra.gmra.mrb[4].mxu1 %vm510_vm0, %v421_v6  ;;  %v2121_v6 = vld [vmem:[#allocation8 + $0xc4] ss:$8 sps:$4 sm:$0xff]   ;;  %s1671_s29 = sshll.u32 %s418_s21, 4  ;;  %s1658_s20 = scalar_lea.sflag [#allocation4], %s2751_s23  ;;  %s2917_s29 = int_to_ptr.vmem [resolvable:$true] %s1671_s29 }
  0xca   : > { %s2381_s15 = scalar_lea.vmem %s2917_s29, 128  ;;  %p2990_p7 = scmp.ne.s32.totalorder %s2979_s13, 0 }
  0xcb   : > { %1171 = vmatpush1.bf16.msra.mxu0 %v2096_v17  ;;  %p2382_p2 = scmp.ne.s32.totalorder %s2917_s29, %s2381_s15  ;;  %s2476_s17 = smov [#allocation13]  }
  0xcc   : > { %1172 = vmatprep.subr.bf16.mxu0 %v2097_v18  ;;  %s2385_s27 = sshll.u32 %s2476_s17, 4  ;;  %s2386_s27 = int_to_ptr.vmem [resolvable:$false] %s2385_s27 }
  0xcd   : > { %p2383_p10 = pnand %p2382_p2, %p2990_p7  ;;  %s2387_s9 = scalar_lea.vmem %s2386_s27, 256 }
  0xce   : > { %s2915_s25 = scalar_lea.hbm %s2989_s16, %s1907_s26  ;;  %p2388_p3 = scmp.lt.s32.totalorder %s2917_s29, %s2386_s27 }
  0xcf   : > { %1173 = vmatpush1.bf16.msra.mxu0 %v2099_v19  ;;  %v2811_v19 = vsub.s32 1, %v2771_v27  ;;  %p2384_p11 = pneg %p2383_p10  ;;  %p2389_p12 = scmp.lt.s32.totalorder %s2387_s9, %s2381_s15 }
  0xd0   : > { %1174 = vmatprep.subr.bf16.mxu0 %v2100_v20  ;;  %v2814_v20 = vsub.s32 5, %v2771_v27 }
  0xd1   : > { %v635_v31 = vrot.slane %v2776_v29, %v2811_v19  ;;  %p2390_p13 = por %p2389_p12, %p2388_p3 }
  0xd2   : > { %v639_v26 = vrot.slane %v2776_v29, %v2814_v20  ;;  %v647_v32 = vrot.slane %v2787_v35, %v2814_v20 }
  0xd3   : > { %1175 = vmatpush1.bf16.msra.mxu0 %v2102_v21  ;;  %p2391_p1 = pnand %p2390_p13, %p2384_p11 }
  0xd4   : > { %1176 = vmatprep.subr.bf16.mxu0 %v2103_v22  ;;  %v653_v39 = vpack.c.bf16 %v639_v26, %v639_v26  ;;  %v655_v42 = vpack.c.bf16 %v647_v32, %v647_v32  ;;  %v2141_v26 = vld [vmem:[#allocation8 + $0x124] ss:$8 sps:$4 sm:$0xff]   ;;  %v2144_v32 = vld [vmem:[#allocation8 + $0x134] ss:$8 sps:$4 sm:$0xff]  }
  0xd7   : > { %1177 = vmatpush1.bf16.msra.mxu0 %v2105_v23 }
  0xd8   : > { %1178 = vmatprep.subr.bf16.mxu0 %v2106_v24 }
  0xdb   : > { %1179 = vmatpush1.bf16.msra.mxu0 %v2108_v25 }
  0xdc   : > { %1180 = vmatprep.subr.bf16.mxu0 %v2109_v62 }
  0xdf   : > { %1181 = vmatpush1.bf16.msra.mxu0 %v2111_v63 }
  0xe0   : > { %1182 = vmatprep.subr.bf16.mxu0 %v2112_v0 }
  0xe3   : > { %1183 = vmatpush1.bf16.msra.mxu0 %v2114_v1 }
  0xe4   : > { %1184 = vmatprep.subr.bf16.mxu0 %v2115_v2 }
  0xe7   : > { %1185 = vmatpush1.bf16.msra.mxu0 %v2117_v3 }
  0xe8   : > { %1186 = vmatprep.subr.bf16.mxu0 %v2118_v4 }
  0xeb   : > { %1187 = vmatpush1.bf16.msra.mxu0 %v2120_v5 }
  0xec   : > { %1188 = vmatprep.subr.bf16.mxu0 %v2121_v6 }
  0xef   : > { %1189 = vmatpush1.bf16.msra.mxu0 %v2123_v7 }
  0xf0   : > { %1190 = vmatprep.subr.bf16.mxu0 %v2124_v8 }
  0xf3   : > { %1191 = vmatpush1.bf16.msra.mxu0 %v2126_v9 }
  0xf4   : > { %1192 = vmatprep.subr.bf16.mxu0 %v2127_v10 }
  0xf7   : > { %1193 = vmatpush1.bf16.msra.mxu0 %v2129_v11 }
  0xf8   : > { %1194 = vmatprep.subr.bf16.mxu0 %v2130_v12 }
  0xfb   : > { %1195 = vmatpush1.bf16.msra.mxu0 %v2132_v13 }
  0xfc   : > { %1205 = vmatprep.subr.bf16.mxu0 %v2135_v14 }
 0x194   : > { %v548_v36 = vpop.f32.mrb[0].mxu1 }
 0x195   : > { %v2789_v37 = vadd.f32 %v548_v36, %v457_v33  ;;  %v550_v38 = vpop.f32.mrb[1].mxu1  ;;  %v2828_v36 = vsub.s32 2, %v2771_v27 }
 0x196   : > { %v2793_v40 = vadd.f32 %v550_v38, %v461_v34  ;;  %v552_v41 = vpop.f32.mrb[2].mxu1  ;;  %v2825_v34 = vsub.s32 6, %v2771_v27 }
 0x197   : > { %v603_v43 = vmul.f32 %v2789_v37, %v2789_v37  ;;  %v553_v44 = vpop.f32.mrb[3].mxu1  ;;  %v652_v41 = vpack.c.bf16 %v635_v31, %v635_v31  ;;  %v2139_v31 = vld [vmem:[#allocation8 + $0x120] ss:$8 sps:$4 sm:$0xff]  }
 0x198   : > { %v604_v45 = vmul.f32 %v2793_v40, %v2793_v40  ;;  %v596_v46 = vadd.f32 %v2793_v40, %v2789_v37  ;;  %v695_v44 = vrot.slane %v2776_v29, %v2828_v36 }
 0x19a   : > { %v607_v49 = vadd.f32 %v604_v45, %v603_v43  ;;  %v699_v43 = vrot.slane %v2776_v29, %v2825_v34  ;;  %v707_v45 = vrot.slane %v2787_v35, %v2825_v34  ;;  %v712_v27 = vpack.c.bf16 %v695_v44, %v695_v44  ;;  %v2151_v44 = vld [vmem:[#allocation8 + $0x160] ss:$8 sps:$4 sm:$0xff]  }
 0x19b   : > { %v619_v29 = vpack.c.bf16 %v2793_v40, %v2793_v40 }
 0x19c   : > { %v589_v50 = vpop.f32.mrb[4].mxu1 }
 0x19d   : > { %v590_v51 = vadd.f32 %v589_v50, %v465_v47  ;;  %v591_v52 = vpop.f32.mrb[5].mxu1  ;;  %v657_v47 = vshrl.u32 %v652_v41, 16  ;;  %v715_v50 = vpack.c.bf16 %v707_v45, %v707_v45  ;;  %v2150_v41 = vld [vmem:[#allocation8 + $0x154] ss:$8 sps:$4 sm:$0xff]  }
 0x19e   : > { %v2805_v53 = vadd.f32 %v591_v52, %v469_v48  ;;  %v593_v54 = vpop.f32.mrb[6].mxu1  ;;  %v681_v48 = vshrl.u32 %v655_v42, 16  ;;  %v2148_v42 = vld [vmem:[#allocation8 + $0x150] ss:$8 sps:$4 sm:$0xff]   ;;  %v2156_v45 = vld [vmem:[#allocation8 + $0x174] ss:$8 sps:$4 sm:$0xff]  }
 0x19f   : > { %v605_v55 = vmul.f32 %v590_v51, %v590_v51  ;;  %v594_v56 = vpop.f32.mrb[7].mxu1  ;;  %v597_v57 = vadd.f32 %v596_v46, %v590_v51  ;;  %v620_v17 = vpack.c.bf16 %v590_v51, %v590_v51  ;;  %v665_v46 = vshrl.u32 %v653_v39, 16  ;;  %v2145_v39 = vld [vmem:[#allocation8 + $0x140] ss:$8 sps:$4 sm:$0xff]  }
 0x1a0   : > { %v606_v58 = vmul.f32 %v2805_v53, %v2805_v53  ;;  %v658_v52 = vpack.i.b16 %v657_v47, %v657_v47  ;;  %v682_v54 = vpack.i.b16 %v681_v48, %v681_v48  ;;  %v717_v56 = vpack.i.b16 %v712_v27, %v712_v27  ;;  %v2159_v47 = vld [vmem:[#allocation8 + $0x184] ss:$8 sps:$4 sm:$0xff]   ;;  %v2157_v48 = vld [vmem:[#allocation8 + $0x180] ss:$8 sps:$4 sm:$0xff]  }
 0x1a1   : > { %v598_v59 = vadd.f32 %v597_v57, %v2805_v53  ;;  %v608_v60 = vadd.f32 %v607_v49, %v605_v55  ;;  %v713_v49 = vpack.c.bf16 %v699_v43, %v699_v43  ;;  %v666_v51 = vpack.i.b16 %v665_v46, %v665_v46  ;;  %v2153_v43 = vld [vmem:[#allocation8 + $0x164] ss:$8 sps:$4 sm:$0xff]   ;;  %v2154_v46 = vld [vmem:[#allocation8 + $0x170] ss:$8 sps:$4 sm:$0xff]  }
 0x1a2   : > { %v738_v57 = vpack.i.b16 %v715_v50, %v715_v50  ;;  %v663_v62 = vrot.slane %v658_v52, %v2774_v28  ;;  %v687_v63 = vrot.slane %v682_v54, %v2774_v28  ;;  %v722_v4 = vrot.slane %v717_v56, %v2811_v19  ;;  %v2160_v50 = vld [vmem:[#allocation8 + $0x190] ss:$8 sps:$4 sm:$0xff]   ;;  %v2163_v54 = vld [vmem:[#allocation8 + $0x1a0] ss:$8 sps:$4 sm:$0xff]  }
 0x1a3   : > { %599 = vadd.xlane.f32.xlu0 %v598_v59  ;;  %v609_v61 = vadd.f32 %v608_v60, %v606_v58  ;;  %v724_v55 = vpack.i.b16 %v713_v49, %v713_v49  ;;  %v618_v58 = vpack.c.bf16 %v2789_v37, %v2789_v37  ;;  %v621_v59 = vpack.c.bf16 %v2805_v53, %v2805_v53  ;;  %v2162_v49 = vld [vmem:[#allocation8 + $0x194] ss:$8 sps:$4 sm:$0xff]  }
 0x1a4   : > { %v743_v40 = vrot.slane %v738_v57, %v2811_v19  ;;  %v643_v27 = vrot.slane %v2787_v35, %v2811_v19  ;;  %v703_v57 = vrot.slane %v2787_v35, %v2828_v36 }
 0x1a5   : > { %v729_v37 = vrot.slane %v724_v55, %v2811_v19  ;;  %v2168_v55 = vld [vmem:[#allocation8 + $0x1b4] ss:$8 sps:$4 sm:$0xff]  }
 0x1a6   : > { %v654_v52 = vpack.c.bf16 %v643_v27, %v643_v27 }
 0x1a7   : > { %610 = vadd.xlane.f32.xlu0 %v609_v61  ;;  %v671_v61 = vrot.slane %v666_v51, %v2774_v28  ;;  %v2165_v51 = vld [vmem:[#allocation8 + $0x1a4] ss:$8 sps:$4 sm:$0xff]  }
 0x1a8   : > { %v673_v56 = vshrl.u32 %v654_v52, 16 }
 0x230   : > { %v600_v15 = vpop.xlane.xlu0 %599 }
 0x231   : > { %v602_v16 = vmul.f32 0.001953125, %v600_v15 }
 0x233   : > { %v622_v18 = vpack.c.bf16 %v602_v16, %v602_v16  ;;  %v613_v22 = vmul.f32 %v602_v16, %v602_v16  ;;  %v2133_v16 = vld [vmem:[#allocation8 + $0x100] ss:$8 sps:$4 sm:$0xff]  }
 0x234   : > { %v611_v21 = vpop.xlane.xlu0 %610 }
 0x235   : > { %v2816_v23 = vsub.bf16 %v620_v17, %v622_v18  ;;  %v612_v24 = vmul.f32 0.001953125, %v611_v21  ;;  %v623_v0 = vsub.bf16 %v618_v58, %v622_v18  ;;  %v626_v1 = vsub.bf16 %v621_v59, %v622_v18  ;;  %v2166_v58 = vld [vmem:[#allocation8 + $0x1b0] ss:$8 sps:$4 sm:$0xff]  }
 0x236   : > { %v624_v3 = vsub.bf16 %v619_v29, %v622_v18  ;;  %v2171_v29 = vld [vmem:[#allocation8 + $0x1c4] ss:$8 sps:$4 sm:$0xff]   ;;  %v674_v59 = vpack.i.b16 %v673_v56, %v673_v56 }
 0x237   : > { %v614_v25 = vsub.f32 %v612_v24, %v613_v22  ;;  %v2138_v22 = vld [vmem:[#allocation8 + $0x114] ss:$8 sps:$4 sm:$0xff]  }
 0x239   : > { %v615_v33 = vmax.f32 %v614_v25, 0.0  ;;  %v2136_v25 = vld [vmem:[#allocation8 + $0x110] ss:$8 sps:$4 sm:$0xff]  }
 0x23b   : > { %v616_v38 = vadd.f32 1e-05, %v615_v33  ;;  %v2142_v33 = vld [vmem:[#allocation8 + $0x130] ss:$8 sps:$4 sm:$0xff]  }
 0x23d   : > { %2205 = vrsqrt.f32 %v616_v38  ;;  %v2147_v38 = vld [vmem:[#allocation8 + $0x144] ss:$8 sps:$4 sm:$0xff]  }
 0x247   : > { %v2206_v60 = vpop.eup %2205 }
 0x248   : > { %v2845_v2 = vpack.c.bf16 %v2206_v60, %v2206_v60  ;;  %v714_v60 = vpack.c.bf16 %v703_v57, %v703_v57 }
 0x24a   : > { %v629_v53 = vmul.bf16 %v2845_v2, %v624_v3  ;;  %v628_v5 = vmul.bf16 %v2845_v2, %v623_v0  ;;  %v631_v6 = vmul.bf16 %v2845_v2, %v626_v1  ;;  %v630_v7 = vmul.bf16 %v2845_v2, %v2816_v23  ;;  %v2172_v1 = vld [vmem:[#allocation8 + $0x1d0] ss:$8 sps:$4 sm:$0xff]   ;;  %v2177_v3 = vld [vmem:[#allocation8 + $0x1e4] ss:$8 sps:$4 sm:$0xff]  }
 0x24b   : > { %v731_v0 = vpack.i.b16 %v714_v60, %v714_v60  ;;  %v2867_v23 = vld [vmem:[%s2963_s4] sm:$0x77] }
 0x24c   : > { %v689_v8 = vmul.bf16 %v671_v61, %v629_v53  ;;  %v688_v9 = vmul.bf16 %v663_v62, %v628_v5  ;;  %v691_v10 = vmul.bf16 %v687_v63, %v631_v6  ;;  %v2169_v61 = vld [vmem:[#allocation8 + $0x1c0] ss:$8 sps:$4 sm:$0xff]   ;;  %v2174_v62 = vld [vmem:[#allocation8 + $0x1d4] ss:$8 sps:$4 sm:$0xff]   ;;  %v679_v63 = vrot.slane %v674_v59, %v2774_v28  ;;  %v2178_v5 = vld [vmem:[#allocation8 + $0x1f0] ss:$8 sps:$4 sm:$0xff]  }
 0x24d   : > { %v829_v2 = vrot.slane %v2867_v23, %v2774_v28  ;;  %v1307_v59 = vrot.slane %v2867_v23, %v2825_v34  ;;  %v1303_v60 = vrot.slane %v2867_v23, %v2828_v36 }
 0x24e   : > { %v745_v11 = vadd.bf16 %v729_v37, %v689_v8  ;;  %v744_v12 = vadd.bf16 %v722_v4, %v688_v9  ;;  %v747_v13 = vadd.bf16 %v743_v40, %v691_v10  ;;  %v690_v35 = vmul.bf16 %v679_v63, %v630_v7  ;;  %v2175_v4 = vld [vmem:[#allocation8 + $0x1e0] ss:$8 sps:$4 sm:$0xff]   ;;  %v2180_v40 = vld [vmem:[#allocation8 + $0x1f4] ss:$8 sps:$4 sm:$0xff]  }
 0x24f   : > { %v736_v37 = vrot.slane %v731_v0, %v2811_v19  ;;  %v833_v7 = vrot.slane %v2867_v23, %v2779_v30  ;;  %v839_v9 = vrot.slane %v829_v2, %v2774_v28  ;;  %v1311_v63 = vpack.c.bf16 %v1307_v59, %v1307_v59 }
 0x250   : > { %vm749_vm1 = vcmp.gt.bf16.partialorder %v745_v11, 0  ;;  %v753_v14 = vmul.bf16 1045249613, %v745_v11  ;;  %vm748_vm2 = vcmp.gt.bf16.partialorder %v744_v12, 0  ;;  %v752_v15 = vmul.bf16 1045249613, %v744_v12 }
 0x251   : > { %vm751_vm3 = vcmp.gt.bf16.partialorder %v747_v13, 0  ;;  %v755_v17 = vmul.bf16 1045249613, %v747_v13  ;;  %v746_v53 = vadd.bf16 %v736_v37, %v690_v35  ;;  %v843_v10 = vrot.slane %v833_v7, %v2774_v28 }
 0x252   : > { %v757_v18 = vsel %vm749_vm1, %v745_v11, %v753_v14  ;;  %v756_v21 = vsel %vm748_vm2, %v744_v12, %v752_v15  ;;  %v1310_v0 = vpack.c.bf16 %v1303_v60, %v1303_v60 }
 0x253   : > { %1196 = vmatprep.mubr.bf16.mxu0 %v757_v18  ;;  %v759_v24 = vsel %vm751_vm3, %v747_v13, %v755_v17  ;;  %v754_v6 = vmul.bf16 1045249613, %v746_v53  ;;  %vm750_vm4 = vcmp.gt.bf16.partialorder %v746_v53, 0 }
 0x254   : > { %1197 = vmatmul.mubr.bf16.vlgmr.msra.gmra.mrb[0].mxu0 %v756_v21 }
 0x255   : > { %1206 = vmatpush1.bf16.msra.mxu0 %v2133_v16  ;;  %1237 = vmatprep.mubr.bf16.mxu0 %v759_v24  ;;  %v758_v8 = vsel %vm750_vm4, %v746_v53, %v754_v6  ;;  %v2182_v24 = vld [vmem:[#allocation10] sm:$0xff]  }
 0x256   : > { %1207 = vmatprep.subr.bf16.mxu0 %v2138_v22  ;;  %v2181_v22 = vld [vmem:[#allocation10 + $0x40] sm:$0xff]  }
 0x257   : > { %1910 = vmatprep.subr.bf16.mxu1 %v2181_v22 }
 0x258   : > { %1911 = vmatpush3.bf16.msra.mxu1 %v2182_v24 }
 0x259   : > { %1208 = vmatpush1.bf16.msra.mxu0 %v2136_v25  ;;  %v2183_v25 = vld [vmem:[#allocation10 + $0x48] sm:$0xff]  }
 0x25a   : > { %1209 = vmatprep.subr.bf16.mxu0 %v2141_v26  ;;  %v2184_v26 = vld [vmem:[#allocation10 + $0x8] sm:$0xff]   ;;  %1912 = vmatprep.subr.bf16.mxu1 %v2183_v25 }
 0x25c   : > { %1913 = vmatpush3.bf16.msra.mxu1 %v2184_v26 }
 0x25d   : > { %1210 = vmatpush1.bf16.msra.mxu0 %v2139_v31  ;;  %v2185_v31 = vld [vmem:[#allocation10 + $0x50] sm:$0xff]  }
 0x25e   : > { %1211 = vmatprep.subr.bf16.mxu0 %v2144_v32  ;;  %v2186_v32 = vld [vmem:[#allocation10 + $0x10] sm:$0xff]   ;;  %1914 = vmatprep.subr.bf16.mxu1 %v2185_v31 }
 0x260   : > { %1915 = vmatpush3.bf16.msra.mxu1 %v2186_v32 }
 0x261   : > { %1212 = vmatpush1.bf16.msra.mxu0 %v2142_v33  ;;  %v2187_v33 = vld [vmem:[#allocation10 + $0x58] sm:$0xff]  }
 0x262   : > { %1213 = vmatprep.subr.bf16.mxu0 %v2147_v38  ;;  %v2188_v38 = vld [vmem:[#allocation10 + $0x18] sm:$0xff]   ;;  %1916 = vmatprep.subr.bf16.mxu1 %v2187_v33  ;;  %v2197_v33 = vld [vmem:[#allocation11] sm:$0xff]  }
 0x264   : > { %1917 = vmatpush3.bf16.msra.mxu1 %v2188_v38  ;;  %v2474_v38 = vmov 0.0  }
 0x265   : > { %1214 = vmatpush1.bf16.msra.mxu0 %v2145_v39  ;;  %v2189_v39 = vld [vmem:[#allocation10 + $0x60] sm:$0xff]  }
 0x266   : > { %1215 = vmatprep.subr.bf16.mxu0 %v2150_v41  ;;  %v2190_v41 = vld [vmem:[#allocation10 + $0x20] sm:$0xff]   ;;  %1918 = vmatprep.subr.bf16.mxu1 %v2189_v39  ;;  %v2198_v39 = vld [vmem:[#allocation11 + $0x8] sm:$0xff]  }
 0x268   : > { %1919 = vmatpush3.bf16.msra.mxu1 %v2190_v41  ;;  %v2199_v41 = vld [vmem:[#allocation11 + $0x10] sm:$0xff]  }
 0x269   : > { %1216 = vmatpush1.bf16.msra.mxu0 %v2148_v42  ;;  %v2191_v42 = vld [vmem:[#allocation10 + $0x68] sm:$0xff]  }
 0x26a   : > { %1217 = vmatprep.subr.bf16.mxu0 %v2153_v43  ;;  %v2192_v43 = vld [vmem:[#allocation10 + $0x28] sm:$0xff]   ;;  %1920 = vmatprep.subr.bf16.mxu1 %v2191_v42  ;;  %v2200_v42 = vld [vmem:[#allocation11 + $0x18] sm:$0xff]  }
 0x26c   : > { %1921 = vmatpush3.bf16.msra.mxu1 %v2192_v43  ;;  %v2201_v43 = vld [vmem:[#allocation11 + $0x20] sm:$0xff]  }
 0x26d   : > { %1218 = vmatpush1.bf16.msra.mxu0 %v2151_v44  ;;  %v2193_v44 = vld [vmem:[#allocation10 + $0x70] sm:$0xff]  }
 0x26e   : > { %1219 = vmatprep.subr.bf16.mxu0 %v2156_v45  ;;  %v2194_v45 = vld [vmem:[#allocation10 + $0x30] sm:$0xff]   ;;  %1922 = vmatprep.subr.bf16.mxu1 %v2193_v44  ;;  %v2202_v44 = vld [vmem:[#allocation11 + $0x28] sm:$0xff]  }
 0x270   : > { %1923 = vmatpush3.bf16.msra.mxu1 %v2194_v45  ;;  %v2203_v45 = vld [vmem:[#allocation11 + $0x30] sm:$0xff]  }
 0x271   : > { %1220 = vmatpush1.bf16.msra.mxu0 %v2154_v46  ;;  %v2195_v46 = vld [vmem:[#allocation10 + $0x78] sm:$0xff]  }
 0x272   : > { %1221 = vmatprep.subr.bf16.mxu0 %v2159_v47  ;;  %v2196_v47 = vld [vmem:[#allocation10 + $0x38] sm:$0xff]   ;;  %1924 = vmatprep.subr.bf16.mxu1 %v2195_v46 }
 0x273   : > { %v2204_v46 = vld [vmem:[#allocation11 + $0x38] sm:$0xff]  }
 0x274   : > { %1925 = vmatpush3.bf16.msra.mxu1 %v2196_v47 }
 0x275   : > { %1222 = vmatpush1.bf16.msra.mxu0 %v2157_v48  ;;  %1941 = vmatprep.subr.bf16.mxu1 %v2474_v38 }
 0x276   : > { %1223 = vmatprep.subr.bf16.mxu0 %v2162_v49 }
 0x279   : > { %1224 = vmatpush1.bf16.msra.mxu0 %v2160_v50 }
 0x27a   : > { %1225 = vmatprep.subr.bf16.mxu0 %v2165_v51 }
 0x27d   : > { %1226 = vmatpush1.bf16.msra.mxu0 %v2163_v54  ;;  %v1277_v54 = vrot.slane %v2867_v23, %v2814_v20 }
 0x27e   : > { %1227 = vmatprep.subr.bf16.mxu0 %v2168_v55  ;;  %v1273_v55 = vrot.slane %v2867_v23, %v2811_v19 }
 0x281   : > { %1228 = vmatpush1.bf16.msra.mxu0 %v2166_v58  ;;  %v1281_v58 = vpack.c.bf16 %v1277_v54, %v1277_v54 }
 0x282   : > { %1229 = vmatprep.subr.bf16.mxu0 %v2171_v29  ;;  %v1280_v29 = vpack.c.bf16 %v1273_v55, %v1273_v55 }
 0x285   : > { %1230 = vmatpush1.bf16.msra.mxu0 %v2169_v61  ;;  %v1291_v61 = vshrl.u32 %v1281_v58, 16 }
 0x286   : > { %1231 = vmatprep.subr.bf16.mxu0 %v2174_v62  ;;  %v1283_v62 = vshrl.u32 %v1280_v29, 16 }
 0x289   : > { %1232 = vmatpush1.bf16.msra.mxu0 %v2172_v1  ;;  %v1292_v1 = vpack.i.b16 %v1291_v61, %v1291_v61 }
 0x28a   : > { %1233 = vmatprep.subr.bf16.mxu0 %v2177_v3  ;;  %v1284_v3 = vpack.i.b16 %v1283_v62, %v1283_v62 }
 0x28b   : > { %v1297_v34 = vrot.slane %v1292_v1, %v2774_v28 }
 0x28d   : > { %1234 = vmatpush1.bf16.msra.mxu0 %v2175_v4  ;;  %v1320_v4 = vpack.i.b16 %v1311_v63, %v1311_v63 }
 0x28e   : > { %1235 = vmatprep.subr.bf16.mxu0 %v2180_v40  ;;  %v1313_v40 = vpack.i.b16 %v1310_v0, %v1310_v0 }
 0x28f   : > { %v1325_v7 = vrot.slane %v1320_v4, %v2811_v19  ;;  %v1897_v4 = vld [vmem:[%s2967_s8] ss:$0 sm:$0xff] }
 0x291   : > { %1236 = vmatpush1.bf16.msra.mxu0 %v2178_v5 }
 0x294   : > { %1238 = vmatmul.mubr.bf16.vlgmr.msra.gmra.mrb[0].mxu0 %v758_v8  ;;  %v1289_v8 = vrot.slane %v1284_v3, %v2774_v28 }
 0x367   : > { %v1239_v11 = vpop.f32.mrb[0].mxu0 }
 0x368   : > { %v2875_v12 = vadd.f32 %v1239_v11, %v839_v9  ;;  %v1241_v13 = vpop.f32.mrb[1].mxu0  ;;  %v1318_v9 = vrot.slane %v1313_v40, %v2811_v19 }
 0x369   : > { %v2877_v14 = vadd.f32 %v1241_v13, %v843_v10  ;;  %v1243_v15 = vpop.f32.mrb[2].mxu0 }
 0x36a   : > { %v1244_v16 = vpop.f32.mrb[3].mxu0  ;;  %v1251_v17 = vmul.f32 %v2875_v12, %v2875_v12  ;;  %v1262_v35 = vpack.c.bf16 %v2875_v12, %v2875_v12 }
 0x36b   : > { %v1246_v18 = vadd.f32 %v2877_v14, %v2875_v12  ;;  %v1252_v30 = vmul.f32 %v2877_v14, %v2877_v14  ;;  %v1263_v37 = vpack.c.bf16 %v2877_v14, %v2877_v14 }
 0x36d   : > { %1247 = vadd.xlane.f32.xlu1 %v1246_v18  ;;  %v1253_v21 = vadd.f32 %v1252_v30, %v1251_v17  ;;  %v1334_v18 = vld [vmem:[%s2965_s6] sm:$0x7] }
 0x36e   : > { %v1525_v55 = vpack.c.bf16 %v1334_v18, %v1334_v18 }
 0x370   : > { %v1535_v29 = vpack.i.b16 %v1525_v55, %v1525_v55 }
 0x371   : > { %1254 = vadd.xlane.f32.xlu1 %v1253_v21  ;;  %v1370_v21 = vrot.slane %v1334_v18, %v2774_v28 }
 0x372   : > { %v1540_v1 = vrot.slane %v1535_v29, %v2811_v19 }
 0x3fa   : > { %v1248_v48 = vpop.xlane.xlu1 %1247 }
 0x3fb   : > { %v1250_v49 = vmul.f32 0.00390625, %v1248_v48 }
 0x3fd   : > { %v1257_v50 = vmul.f32 %v1250_v49, %v1250_v49  ;;  %v1264_v20 = vpack.c.bf16 %v1250_v49, %v1250_v49 }
 0x3fe   : > { %v1255_v27 = vpop.xlane.xlu1 %1254 }
 0x3ff   : > { %v1256_v51 = vmul.f32 0.00390625, %v1255_v27  ;;  %v1265_v5 = vsub.bf16 %v1262_v35, %v1264_v20  ;;  %v1266_v36 = vsub.bf16 %v1263_v37, %v1264_v20 }
 0x401   : > { %v1258_v52 = vsub.f32 %v1256_v51, %v1257_v50 }
 0x403   : > { %v1259_v56 = vmax.f32 %v1258_v52, 0.0 }
 0x405   : > { %v1260_v57 = vadd.f32 1e-05, %v1259_v56  ;;  %v1527_v56 = vshrl.u32 %v1525_v55, 16 }
 0x407   : > { %2207 = vrsqrt.f32 %v1260_v57  ;;  %v1528_v57 = vpack.i.b16 %v1527_v56, %v1527_v56 }
 0x409   : > { %v1533_v61 = vrot.slane %v1528_v57, %v2774_v28 }
 0x411   : > { %v2208_v53 = vpop.eup %2207 }
 0x412   : > { %v1267_v6 = vpack.c.bf16 %v2208_v53, %v2208_v53 }
 0x414   : > { %v1268_v23 = vmul.bf16 %v1267_v6, %v1265_v5  ;;  %v1269_v2 = vmul.bf16 %v1267_v6, %v1266_v36 }
 0x416   : > { %v1299_v10 = vmul.bf16 %v1297_v34, %v1269_v2  ;;  %v1298_v11 = vmul.bf16 %v1289_v8, %v1268_v23 }
 0x418   : > { %v1327_v12 = vadd.bf16 %v1325_v7, %v1299_v10  ;;  %v1326_v13 = vadd.bf16 %v1318_v9, %v1298_v11 }
 0x41a   : > { %vm1329_vm5 = vcmp.gt.bf16.partialorder %v1327_v12, 0  ;;  %v1331_v14 = vmul.bf16 1045249613, %v1327_v12  ;;  %vm1328_vm6 = vcmp.gt.bf16.partialorder %v1326_v13, 0  ;;  %v1330_v15 = vmul.bf16 1045249613, %v1326_v13 }
 0x41c   : > { %v1333_v16 = vsel %vm1329_vm5, %v1327_v12, %v1331_v14  ;;  %v1332_v17 = vsel %vm1328_vm6, %v1326_v13, %v1330_v15 }
 0x41d   : > { %1499 = vmatprep.mubr.bf16.mxu1 %v1333_v16 }
 0x41e   : > { %1500 = vmatmul.mubr.bf16.vlgmr.msra.gmra.mrb[8].mxu1 %v1332_v17 }
 0x41f   : > { %1942 = vmatpush3.bf16.msra.mxu1 %v2197_v33  ;;  %1957 = vmatprep.mubr.msk.bf16.mxu1 %vm2475_vm7, %v2474_v38 }
 0x420   : > { %1943 = vmatprep.subr.bf16.mxu1 %v2474_v38 }
 0x423   : > { %1944 = vmatpush3.bf16.msra.mxu1 %v2198_v39 }
 0x424   : > { %1945 = vmatprep.subr.bf16.mxu1 %v2474_v38 }
 0x427   : > { %1946 = vmatpush3.bf16.msra.mxu1 %v2199_v41 }
 0x428   : > { %1947 = vmatprep.subr.bf16.mxu1 %v2474_v38 }
 0x42b   : > { %1948 = vmatpush3.bf16.msra.mxu1 %v2200_v42 }
 0x42c   : > { %1949 = vmatprep.subr.bf16.mxu1 %v2474_v38 }
 0x42f   : > { %1950 = vmatpush3.bf16.msra.mxu1 %v2201_v43 }
 0x430   : > { %1951 = vmatprep.subr.bf16.mxu1 %v2474_v38 }
 0x433   : > { %1952 = vmatpush3.bf16.msra.mxu1 %v2202_v44 }
 0x434   : > { %1953 = vmatprep.subr.bf16.mxu1 %v2474_v38 }
 0x437   : > { %1954 = vmatpush3.bf16.msra.mxu1 %v2203_v45 }
 0x438   : > { %1955 = vmatprep.subr.bf16.mxu1 %v2474_v38 }
 0x43b   : > { %1956 = vmatpush3.bf16.msra.mxu1 %v2204_v46 }
 0x4f1   : > { %v1926_v30 = vpop.f32.mrb[8].mxu1 }
 0x4f2   : > { %v1927_v22 = vpop.f32.mrb[9].mxu1 }
 0x4f3   : > { %v1928_v24 = vadd.f32 %v1927_v22, %v1926_v30  ;;  %v1929_v25 = vpop.f32.mrb[10].mxu1 }
 0x4f4   : > { %v1930_v26 = vpop.f32.mrb[11].mxu1 }
 0x4f5   : > { %v1502_v31 = vadd.f32 %v1928_v24, %v1370_v21 }
 0x4f7   : > { %1507 = vadd.xlane.f32.xlu0 %v1502_v31  ;;  %v1511_v32 = vmul.f32 %v1502_v31, %v1502_v31  ;;  %v1520_v59 = vpack.c.bf16 %v1502_v31, %v1502_v31 }
 0x4f9   : > { %1512 = vadd.xlane.f32.xlu1 %v1511_v32 }
 0x584   : > { %v1508_v47 = vpop.xlane.xlu0 %1507 }
 0x585   : > { %v1510_v48 = vmul.f32 0.0078125, %v1508_v47 }
 0x586   : > { %v1513_v49 = vpop.xlane.xlu1 %1512 }
 0x587   : > { %v1515_v27 = vmul.f32 %v1510_v48, %v1510_v48  ;;  %v1514_v50 = vmul.f32 0.0078125, %v1513_v49  ;;  %v1521_v58 = vpack.c.bf16 %v1510_v48, %v1510_v48 }
 0x589   : > { %v1516_v51 = vsub.f32 %v1514_v50, %v1515_v27  ;;  %v1522_v62 = vsub.bf16 %v1520_v59, %v1521_v58 }
 0x58b   : > { %v1517_v52 = vmax.f32 %v1516_v51, 0.0 }
 0x58d   : > { %v1518_v54 = vadd.f32 1e-05, %v1517_v52 }
 0x58f   : > { %2209 = vrsqrt.f32 %v1518_v54 }
 0x599   : > { %v2210_v60 = vpop.eup %2209 }
 0x59a   : > { %v1523_v63 = vpack.c.bf16 %v2210_v60, %v2210_v60 }
 0x59c   : > { %v1524_v0 = vmul.bf16 %v1523_v63, %v1522_v62 }
 0x59e   : > { %v1534_v20 = vmul.bf16 %v1533_v61, %v1524_v0 }
 0x5a0   : > { %v1541_v3 = vadd.bf16 %v1540_v1, %v1534_v20 }
 0x5a2   : > { %vm1542_vm8 = vcmp.gt.bf16.partialorder %v1541_v3, 0  ;;  %v1543_v35 = vmul.bf16 1045249613, %v1541_v3 }
 0x5a4   : > { %v1544_v37 = vsel %vm1542_vm8, %v1541_v3, %v1543_v35 }
 0x5a5   : > { %1958 = vmatmul.mubr.bf16.vlgmr.msra.gmra.mrb[12].mxu1 %v1544_v37 }
 0x678   : > { %v1650_v28 = vpop.f32.mrb[12].mxu1 }
 0x679   : > { %v1651_v40 = vadd.f32 %v1897_v4, %v1650_v28  ;;  %v1959_v53 = vpop.f32.mrb[13].mxu1 }
 0x67a   : > { %v1653_v19 = vpop.f32.mrb[14].mxu1 }
 0x67b   : > { %1656 = vst [vmem:[%s418_s21] sm:$0xff] %v1651_v40  ;;  %v1960_v34 = vpop.f32.mrb[15].mxu1 }
 0x67c   : > { %2394 = shalt.err (!%p2391_p1)
}
 0x67d   : > { %s2395_s23 = scalar_lea.hbm %s2915_s25, 128  ;;  %s2399_s21 = scalar_lea.hbm %s2989_s16, 256 }
 0x67e   : > { %p2396_p6 = scmp.ne.s32.totalorder %s2915_s25, %s2395_s23  ;;  %p2400_p8 = scmp.lt.u32.totalorder %s2915_s25, %s2989_s16 }
 0x67f   : > { %p2401_p0 = scmp.lt.u32.totalorder %s2399_s21, %s2395_s23  ;;  %p2403_p2 = scmp.lt.u32.totalorder %s2395_s23, %s2915_s25 }
 0x680   : > { %p2397_p9 = pnand %p2396_p6, %p2990_p7 }
 0x681   : > { %p2402_p5 = por %p2401_p0, %p2400_p8 }
 0x682   : > { %p2398_p4 = pneg %p2397_p9 }
 0x683   : > { %p2404_p10 = por %p2403_p2, %p2402_p5 }
 0x685   : > { %p2405_p11 = pnand %p2404_p10, %p2398_p4 }
 0x687   : > { %2408 = shalt.err (!%p2405_p11)
}
 0x688   : > { %1989 = dma.vmem_to_hbm [thread:$0]  (%p2990_p7), %s2917_s29, 128, %s2915_s25, %s1658_s20  }
 0x689 PF: > { %s1683_s15 = sand.u32 1, %s2447_s30   ;;  %p2991_p3 = scmp.ne.s32.totalorder %s2980_s22, 0 }
 0x68a   : > { %p2992_p12 = scmp.ge.s32.totalorder %s2459_s12, 2  ;;  %s1684_s17 = scalar_lea.sflag [#allocation4], %s1683_s15 }
 0x68c   : > { %p2012_p13 = pnand %p2992_p12, %p2991_p3 }
 0x68e   : > { %2442 = dma.done.wait (!%p2012_p13), %s1684_s17, 128  }
 0x68f   : > { %2444 = vsyncadd (!%p2012_p13), %s1684_s17, 4294967168  ;;  %p25_p1 = scmp.ge.s32.totalorder %s2681_s19, 4   ;;  %s2993_s30 = smov %s2451_s10 }
 0x690   : > { %s2994_s10 = smov %s2455_s11  ;;  %s2995_s11 = smov %s2693_s24 }
 0x691   : > { %s2996_s12 = smov %s2681_s19  ;;  %27 = sbr.rel (!%p25_p1) target bundleno = 10 (0xa), region = 121 }
 0x698   :  { %1689 = vsyncpa [#allocation3], 1 }
 0x699   :  { %1691 = vsyncpa [#allocation3 + $0x1], 1 }
 0x69a   :  { %1692 = vsyncpa [#allocation6], 1 }
 0x69b   :  { %1693 = vsyncpa [#allocation9], 1 }
 0x69c   :  { %1694 = vsyncpa [#allocation12], 1 }
 0x69d   :  { %1695 = vsyncpa [#allocation4], 1 }
 0x69e   :  { %1697 = vsyncpa [#allocation4 + $0x1], 1 }

</bundles_post_ra>
